<compile_context>
chip_gen: v7x
topology: tpu7x:2x2x1
jax: 0.10.0
libtpu: 0.0.40
codegen_flags: <defaults>
</compile_context>

<pallas_src>
import jax
import jax.numpy as jnp
import numpy as np
from jax.experimental import pallas as pl
from jax.experimental.pallas import tpu as pltpu

EPS = 1e-5
NEG_SLOPE = 0.2


# ----------------------------------------------------------------------------
# Banded conv-as-matmul weight packing (built once per call from the tiny 3x3
# weights).  For a pad-1 3x3 conv:
#       out_row[i] = sum_dy  in_row[stride*i + dy - 1] @ B_dy
# with out-of-range rows contributing zero; horizontal taps and the left/right
# zero padding are folded into the band structure of B_dy.
# ----------------------------------------------------------------------------
def _banded_row_mats(w_oihw, w_in, stride):
    cout, cin = w_oihw.shape[0], w_oihw.shape[1]
    wo = (w_in + 2 - 3) // stride + 1
    wt = jnp.transpose(w_oihw, (2, 3, 1, 0))            # (dy, dx, cin, cout)
    w_pos = jnp.arange(w_in)[:, None]                   # input column
    j_pos = jnp.arange(wo)[None, :]                     # output column
    dx = w_pos - stride * j_pos + 1                     # tap index, (w_in, wo)
    valid = (dx >= 0) & (dx <= 2)
    dx_c = jnp.clip(dx, 0, 2)
    mats = []
    for dy in range(3):
        t = wt[dy][dx_c]                                 # (w_in, wo, cin, cout)
        t = jnp.where(valid[:, :, None, None], t, 0.0)
        mats.append(jnp.transpose(t, (0, 2, 1, 3)).reshape(w_in * cin, wo * cout))
    return mats


def _pack_stride2(w_oihw, w_in):
    """Stride-2 conv:  out[i] = pair[i] @ M[:, :G] + pair[i-1] @ M[:, G:],
    where pair[i] = input rows (2i, 2i+1) flattened to one vector."""
    b0, b1, b2 = _banded_row_mats(w_oihw, w_in, 2)
    cur = jnp.concatenate([b1, b2], axis=0)                    # rows 2i (dy=1), 2i+1 (dy=2)
    prev = jnp.concatenate([jnp.zeros_like(b0), b0], axis=0)   # row 2i-1 (dy=0, prev pair)
    return jnp.concatenate([cur, prev], axis=1)


def _pack_stride1(w_oihw, w_in):
    """Stride-1 conv:  out[i] = r[i-1, :G] + r[i, G:2G] + r[i+1, 2G:],  r = A @ M."""
    b0, b1, b2 = _banded_row_mats(w_oihw, w_in, 1)
    return jnp.concatenate([b0, b1, b2], axis=1)


# ----------------------------------------------------------------------------
# Kernel 1 (per image): folded-BN1 affine + LeakyReLU, stride-2 conv1 AND the
# stride-2 skip conv (shared input), plus per-column BN partial sums of both
# outputs so the downstream BatchNorms never re-read h1 / hs from HBM.
# ----------------------------------------------------------------------------
def _stage1_kernel(x_ref, s1_ref, t1_ref, w1_ref, b1_ref, ws_ref, bs_ref,
                   h1_ref, hs_ref, st1_ref, sts_ref):
    ho, g1 = h1_ref.shape
    g2 = hs_ref.shape[-1]

    x = x_ref[...]                                     # (Ho, 2*W*Cin) row pairs
    a = x * s1_ref[...] + t1_ref[...]                  # folded BN1 (training-mode)
    a = jnp.where(a >= 0, a, NEG_SLOPE * a)            # LeakyReLU(0.2)

    r1 = jnp.dot(a, w1_ref[...], preferred_element_type=jnp.float32)   # (Ho, 2*G1)
    rs = jnp.dot(x, ws_ref[...], preferred_element_type=jnp.float32)   # (Ho, 2*G2)

    h1_ref[...] = r1[:, :g1] + b1_ref[...]
    hs_ref[...] = rs[:, :g2] + bs_ref[...]
    # dy=0 taps come from the previous row pair -> shift their contribution down one row.
    h1_ref[1:, :] = h1_ref[1:, :] + r1[:ho - 1, g1:]
    hs_ref[1:, :] = hs_ref[1:, :] + rs[:ho - 1, g2:]

    # Per-column (= w*Cmid flat) partial sums for the following BatchNorms.
    h1v = h1_ref[...]
    hsv = hs_ref[...]
    st1_ref[0:1, :] = jnp.sum(h1v, axis=0, keepdims=True)
    st1_ref[1:2, :] = jnp.sum(h1v * h1v, axis=0, keepdims=True)
    sts_ref[0:1, :] = jnp.sum(hsv, axis=0, keepdims=True)
    sts_ref[1:2, :] = jnp.sum(hsv * hsv, axis=0, keepdims=True)


# ----------------------------------------------------------------------------
# Kernel 2 (per image): folded-BN2 affine + LeakyReLU, stride-1 conv2, folded
# skip-BN affine and the residual add, all fused.
# ----------------------------------------------------------------------------
def _stage2_kernel(h1_ref, hs_ref, s2_ref, t2_ref, w2_ref, b2_ref, ss_ref, ts_ref,
                   o_ref):
    ho, g2 = o_ref.shape

    a2 = h1_ref[...] * s2_ref[...] + t2_ref[...]
    a2 = jnp.where(a2 >= 0, a2, NEG_SLOPE * a2)

    r = jnp.dot(a2, w2_ref[...], preferred_element_type=jnp.float32)   # (Ho, 3*G2)
    skip = hs_ref[...] * ss_ref[...] + ts_ref[...]                     # folded skip BN

    o_ref[...] = r[:, g2:2 * g2] + b2_ref[...] + skip
    o_ref[1:, :] = o_ref[1:, :] + r[:ho - 1, :g2]            # dy=0 from row i-1
    o_ref[:ho - 1, :] = o_ref[:ho - 1, :] + r[1:, 2 * g2:]   # dy=2 from row i+1


# ----------------------------------------------------------------------------
# Forward (NCHW in / NCHW out, like the PyTorch module; stride = 2)
# ----------------------------------------------------------------------------
def residual_conv_forward(params, x_nchw):
    N, Cin, H, W = x_nchw.shape
    assert H % 2 == 0 and W % 2 == 0 and H >= 4, "stride-2 path assumes even H, W"
    Ho, Wo = H // 2, W // 2
    Cmid = params["c1_b"].shape[0]
    Cout = params["c2_b"].shape[0]
    G1, G2 = Wo * Cmid, Wo * Cout
    K1 = 2 * W * Cin                                   # one flattened row pair

    # NCHW -> NHWC, then view each pair of rows as one lane-dense vector (free reshape).
    xh = jnp.transpose(x_nchw, (0, 2, 3, 1))           # (N, H, W, Cin)
    x2d = xh.reshape(N, Ho, K1)

    # BN1 statistics over the raw input (no producer kernel exists to fuse this
    # reduction into; it is a single fused pass over x).
    m1 = jnp.mean(xh, axis=(0, 1, 2))
    v1 = jnp.var(xh, axis=(0, 1, 2))
    s1 = params["bn1_g"] * jax.lax.rsqrt(v1 + EPS)
    t1 = params["bn1_b"] - m1 * s1
    s1t = jnp.tile(s1, 2 * W).reshape(1, K1)
    t1t = jnp.tile(t1, 2 * W).reshape(1, K1)

    # Banded conv-as-matmul weights (tiny, built from the 3x3 kernels).
    w1p = _pack_stride2(params["c1_w"], W)             # (K1, 2*G1)
    wsp = _pack_stride2(params["cs_w"], W)             # (K1, 2*G2)
    w2p = _pack_stride1(params["c2_w"], Wo)            # (G1, 3*G2)
    b1t = jnp.tile(params["c1_b"], Wo).reshape(1, G1)
    bst = jnp.tile(params["cs_b"], Wo).reshape(1, G2)
    b2t = jnp.tile(params["c2_b"], Wo).reshape(1, G2)

    h1, hs, st1, sts = pl.pallas_call(
        _stage1_kernel,
        out_shape=(jax.ShapeDtypeStruct((N, Ho, G1), jnp.float32),
                   jax.ShapeDtypeStruct((N, Ho, G2), jnp.float32),
                   jax.ShapeDtypeStruct((N, 2, G1), jnp.float32),
                   jax.ShapeDtypeStruct((N, 2, G2), jnp.float32)),
        grid=(N,),
        in_specs=[
            pl.BlockSpec((None, Ho, K1), lambda n: (n, 0, 0)),
            pl.BlockSpec((1, K1), lambda n: (0, 0)),
            pl.BlockSpec((1, K1), lambda n: (0, 0)),
            pl.BlockSpec((K1, 2 * G1), lambda n: (0, 0)),
            pl.BlockSpec((1, G1), lambda n: (0, 0)),
            pl.BlockSpec((K1, 2 * G2), lambda n: (0, 0)),
            pl.BlockSpec((1, G2), lambda n: (0, 0)),
        ],
        out_specs=(
            pl.BlockSpec((None, Ho, G1), lambda n: (n, 0, 0)),
            pl.BlockSpec((None, Ho, G2), lambda n: (n, 0, 0)),
            pl.BlockSpec((None, 2, G1), lambda n: (n, 0, 0)),
            pl.BlockSpec((None, 2, G2), lambda n: (n, 0, 0)),
        ),
        compiler_params=pltpu.CompilerParams(dimension_semantics=("parallel",)),
    )(x2d, s1t, t1t, w1p, b1t, wsp, bst)

    # Fold BN2 / skip-BN from the in-kernel partial sums (tiny reductions).
    cnt = float(N * Ho * Wo)

    def fold_bn(st, c, gamma, beta):
        ssum = st[:, 0, :].sum(0).reshape(Wo, c).sum(0)
        ssq = st[:, 1, :].sum(0).reshape(Wo, c).sum(0)
        m = ssum / cnt
        v = jnp.maximum(ssq / cnt - m * m, 0.0)        # biased variance (PyTorch training BN)
        s = gamma * jax.lax.rsqrt(v + EPS)
        return s, beta - m * s

    s2, t2 = fold_bn(st1, Cmid, params["bn2_g"], params["bn2_b"])
    ss, ts = fold_bn(sts, Cout, params["bns_g"], params["bns_b"])
    s2t = jnp.tile(s2, Wo).reshape(1, G1)
    t2t = jnp.tile(t2, Wo).reshape(1, G1)
    sst = jnp.tile(ss, Wo).reshape(1, G2)
    tst = jnp.tile(ts, Wo).reshape(1, G2)

    out2d = pl.pallas_call(
        _stage2_kernel,
        out_shape=jax.ShapeDtypeStruct((N, Ho, G2), jnp.float32),
        grid=(N,),
        in_specs=[
            pl.BlockSpec((None, Ho, G1), lambda n: (n, 0, 0)),
            pl.BlockSpec((None, Ho, G2), lambda n: (n, 0, 0)),
            pl.BlockSpec((1, G1), lambda n: (0, 0)),
            pl.BlockSpec((1, G1), lambda n: (0, 0)),
            pl.BlockSpec((G1, 3 * G2), lambda n: (0, 0)),
            pl.BlockSpec((1, G2), lambda n: (0, 0)),
            pl.BlockSpec((1, G2), lambda n: (0, 0)),
            pl.BlockSpec((1, G2), lambda n: (0, 0)),
        ],
        out_specs=pl.BlockSpec((None, Ho, G2), lambda n: (n, 0, 0)),
        compiler_params=pltpu.CompilerParams(dimension_semantics=("parallel",)),
    )(h1, hs, s2t, t2t, w2p, b2t, sst, tst)

    return jnp.transpose(out2d.reshape(N, Ho, Wo, Cout), (0, 3, 1, 2))


# ----------------------------------------------------------------------------
# Pure-JAX reference (sanity check)
# ----------------------------------------------------------------------------
def reference_forward(params, x_nchw, stride=2):
    hp = jax.lax.Precision.HIGHEST
    x = jnp.transpose(x_nchw, (0, 2, 3, 1))

    def bn(t, g, b):
        m = jnp.mean(t, axis=(0, 1, 2))
        v = jnp.var(t, axis=(0, 1, 2))
        return (t - m) * jax.lax.rsqrt(v + EPS) * g + b

    def lrelu(t):
        return jnp.where(t >= 0, t, NEG_SLOPE * t)

    def conv(t, w_oihw, b, s):
        w = jnp.transpose(w_oihw, (2, 3, 1, 0))        # OIHW -> HWIO
        return jax.lax.conv_general_dilated(
            t, w, (s, s), ((1, 1), (1, 1)),
            dimension_numbers=("NHWC", "HWIO", "NHWC"), precision=hp) + b

    a1 = lrelu(bn(x, params["bn1_g"], params["bn1_b"]))
    h1 = conv(a1, params["c1_w"], params["c1_b"], stride)
    a2 = lrelu(bn(h1, params["bn2_g"], params["bn2_b"]))
    xb = conv(a2, params["c2_w"], params["c2_b"], 1)
    hs = conv(x, params["cs_w"], params["cs_b"], stride)
    xs = bn(hs, params["bns_g"], params["bns_b"])
    return jnp.transpose(xb + xs, (0, 3, 1, 2))


# ----------------------------------------------------------------------------
# Deterministic parameter init (shapes match the module __init__)
# ----------------------------------------------------------------------------
def init_params(key, in_ch, out_ch, mid_ch=None):
    if mid_ch is None:
        mid_ch = out_ch
    ks = jax.random.split(key, 12)

    def nrm(k, shape, scale=0.1):
        return scale * jax.random.normal(k, shape, jnp.float32)

    return {
        "bn1_g": 1.0 + nrm(ks[0], (in_ch,)),
        "bn1_b": nrm(ks[1], (in_ch,)),
        "c1_w": nrm(ks[2], (mid_ch, in_ch, 3, 3)),     # Conv2d OIHW
        "c1_b": nrm(ks[3], (mid_ch,)),
        "bn2_g": 1.0 + nrm(ks[4], (mid_ch,)),
        "bn2_b": nrm(ks[5], (mid_ch,)),
        "c2_w": nrm(ks[6], (out_ch, mid_ch, 3, 3)),
        "c2_b": nrm(ks[7], (out_ch,)),
        "cs_w": nrm(ks[8], (out_ch, in_ch, 3, 3)),
        "cs_b": nrm(ks[9], (out_ch,)),
        "bns_g": 1.0 + nrm(ks[10], (out_ch,)),
        "bns_b": nrm(ks[11], (out_ch,)),
    }


if __name__ == "__main__":
    in_ch, out_ch = 8, 16
    N, H, W = 2, 16, 16

    key = jax.random.PRNGKey(0)
    kp, kx = jax.random.split(key)
    params = init_params(kp, in_ch, out_ch)
    x = jax.random.normal(kx, (N, in_ch, H, W), jnp.float32)   # NCHW

    fwd = jax.jit(residual_conv_forward)
    out = jax.block_until_ready(fwd(params, x))
    assert out.shape == (N, out_ch, H // 2, W // 2), out.shape

    ref = jax.block_until_ready(reference_forward(params, x))
    np.testing.assert_allclose(np.asarray(out), np.asarray(ref), rtol=1e-2, atol=1e-2)

    print("KERNEL_OK")
</pallas_src>

<mosaic_0001>
module attributes {stable_mosaic.version = 11 : i64} {
  func.func @_stage1_kernel(%arg0: i32, %arg1: memref<1x8x256xf32, #tpu.memory_space<vmem>>, %arg2: memref<1x256xf32, #tpu.memory_space<vmem>>, %arg3: memref<1x256xf32, #tpu.memory_space<vmem>>, %arg4: memref<256x256xf32, #tpu.memory_space<vmem>>, %arg5: memref<1x128xf32, #tpu.memory_space<vmem>>, %arg6: memref<256x256xf32, #tpu.memory_space<vmem>>, %arg7: memref<1x128xf32, #tpu.memory_space<vmem>>, %arg8: memref<1x8x128xf32, #tpu.memory_space<vmem>>, %arg9: memref<1x8x128xf32, #tpu.memory_space<vmem>>, %arg10: memref<1x2x128xf32, #tpu.memory_space<vmem>>, %arg11: memref<1x2x128xf32, #tpu.memory_space<vmem>>) attributes {dimension_semantics = [#tpu.dimension_semantics<parallel>], iteration_bounds = array<i64: 2>, scalar_prefetch = 0 : i64, scratch_operands = 0 : i64, tpu.core_type = #tpu.core_type<tc>, window_params = [{transform_indices = @transform_0, window_bounds = array<i64: 1, 8, 256>}, {pipeline_mode = #tpu.pipeline_mode<synchronous>, transform_indices = @transform_1, window_bounds = array<i64: 1, 256>}, {pipeline_mode = #tpu.pipeline_mode<synchronous>, transform_indices = @transform_2, window_bounds = array<i64: 1, 256>}, {pipeline_mode = #tpu.pipeline_mode<synchronous>, transform_indices = @transform_3, window_bounds = array<i64: 256, 256>}, {pipeline_mode = #tpu.pipeline_mode<synchronous>, transform_indices = @transform_4, window_bounds = array<i64: 1, 128>}, {pipeline_mode = #tpu.pipeline_mode<synchronous>, transform_indices = @transform_5, window_bounds = array<i64: 256, 256>}, {pipeline_mode = #tpu.pipeline_mode<synchronous>, transform_indices = @transform_6, window_bounds = array<i64: 1, 128>}, {transform_indices = @transform_7, window_bounds = array<i64: 1, 8, 128>}, {transform_indices = @transform_8, window_bounds = array<i64: 1, 8, 128>}, {transform_indices = @transform_9, window_bounds = array<i64: 1, 2, 128>}, {transform_indices = @transform_10, window_bounds = array<i64: 1, 2, 128>}]} {
    %c0 = arith.constant 0 : index
    %c0_0 = arith.constant 0 : index
    %c0_1 = arith.constant 0 : index
    %0 = vector.load %arg1[%c0, %c0_0, %c0_1] : memref<1x8x256xf32, #tpu.memory_space<vmem>>, vector<1x8x256xf32>
    %1 = vector.shape_cast %0 : vector<1x8x256xf32> to vector<8x256xf32>
    %c0_2 = arith.constant 0 : index
    %c0_3 = arith.constant 0 : index
    %2 = vector.load %arg2[%c0_2, %c0_3] : memref<1x256xf32, #tpu.memory_space<vmem>>, vector<1x256xf32>
    %3 = vector.broadcast %2 : vector<1x256xf32> to vector<8x256xf32>
    %4 = arith.mulf %1, %3 : vector<8x256xf32>
    %c0_4 = arith.constant 0 : index
    %c0_5 = arith.constant 0 : index
    %5 = vector.load %arg3[%c0_4, %c0_5] : memref<1x256xf32, #tpu.memory_space<vmem>>, vector<1x256xf32>
    %6 = vector.broadcast %5 : vector<1x256xf32> to vector<8x256xf32>
    %7 = arith.addf %4, %6 : vector<8x256xf32>
    %cst = arith.constant 0.000000e+00 : f32
    %8 = vector.broadcast %cst : f32 to vector<8x256xf32>
    %9 = arith.cmpf oge, %7, %8 : vector<8x256xf32>
    %cst_6 = arith.constant 2.000000e-01 : f32
    %10 = vector.broadcast %cst_6 : f32 to vector<8x256xf32>
    %11 = arith.mulf %10, %7 : vector<8x256xf32>
    %12 = arith.select %9, %7, %11 : vector<8x256xi1>, vector<8x256xf32>
    %c0_7 = arith.constant 0 : index
    %c0_8 = arith.constant 0 : index
    %13 = vector.load %arg4[%c0_7, %c0_8] : memref<256x256xf32, #tpu.memory_space<vmem>>, vector<256x256xf32>
    %cst_9 = arith.constant dense<0.000000e+00> : vector<8x256xf32>
    %14 = tpu.matmul %12, %13, %cst_9 {dimension_numbers = #tpu.dot_dimension_numbers<[1], [0], [0], [1], [0, 0, 1, 1], [], []>} : vector<8x256xf32>, vector<256x256xf32>, vector<8x256xf32> -> vector<8x256xf32>
    %c0_10 = arith.constant 0 : index
    %c0_11 = arith.constant 0 : index
    %15 = vector.load %arg6[%c0_10, %c0_11] : memref<256x256xf32, #tpu.memory_space<vmem>>, vector<256x256xf32>
    %cst_12 = arith.constant dense<0.000000e+00> : vector<8x256xf32>
    %16 = tpu.matmul %1, %15, %cst_12 {dimension_numbers = #tpu.dot_dimension_numbers<[1], [0], [0], [1], [0, 0, 1, 1], [], []>} : vector<8x256xf32>, vector<256x256xf32>, vector<8x256xf32> -> vector<8x256xf32>
    %17 = vector.extract_strided_slice %14 {offsets = [0, 0], sizes = [8, 128], strides = [1, 1]} : vector<8x256xf32> to vector<8x128xf32>
    %c0_13 = arith.constant 0 : index
    %c0_14 = arith.constant 0 : index
    %18 = vector.load %arg5[%c0_13, %c0_14] : memref<1x128xf32, #tpu.memory_space<vmem>>, vector<1x128xf32>
    %19 = vector.broadcast %18 : vector<1x128xf32> to vector<8x128xf32>
    %20 = arith.addf %17, %19 : vector<8x128xf32>
    %c0_15 = arith.constant 0 : index
    %c0_16 = arith.constant 0 : index
    %c0_17 = arith.constant 0 : index
    %21 = vector.load %arg8[%c0_15, %c0_16, %c0_17] : memref<1x8x128xf32, #tpu.memory_space<vmem>>, vector<1x8x128xf32>
    %22 = vector.shape_cast %21 : vector<1x8x128xf32> to vector<8x128xf32>
    %23 = vector.shape_cast %20 : vector<8x128xf32> to vector<1x8x128xf32>
    tpu.vector_store %arg8[%c0_15, %c0_16, %c0_17], %23 {strides = array<i32>} : memref<1x8x128xf32, #tpu.memory_space<vmem>>, vector<1x8x128xf32>,
    %24 = vector.extract_strided_slice %16 {offsets = [0, 0], sizes = [8, 128], strides = [1, 1]} : vector<8x256xf32> to vector<8x128xf32>
    %c0_18 = arith.constant 0 : index
    %c0_19 = arith.constant 0 : index
    %25 = vector.load %arg7[%c0_18, %c0_19] : memref<1x128xf32, #tpu.memory_space<vmem>>, vector<1x128xf32>
    %26 = vector.broadcast %25 : vector<1x128xf32> to vector<8x128xf32>
    %27 = arith.addf %24, %26 : vector<8x128xf32>
    %c0_20 = arith.constant 0 : index
    %c0_21 = arith.constant 0 : index
    %c0_22 = arith.constant 0 : index
    %28 = vector.load %arg9[%c0_20, %c0_21, %c0_22] : memref<1x8x128xf32, #tpu.memory_space<vmem>>, vector<1x8x128xf32>
    %29 = vector.shape_cast %28 : vector<1x8x128xf32> to vector<8x128xf32>
    %30 = vector.shape_cast %27 : vector<8x128xf32> to vector<1x8x128xf32>
    tpu.vector_store %arg9[%c0_20, %c0_21, %c0_22], %30 {strides = array<i32>} : memref<1x8x128xf32, #tpu.memory_space<vmem>>, vector<1x8x128xf32>,
    %c0_23 = arith.constant 0 : index
    %c1 = arith.constant 1 : index
    %c0_24 = arith.constant 0 : index
    %31 = vector.load %arg8[%c0_23, %c1, %c0_24] : memref<1x8x128xf32, #tpu.memory_space<vmem>>, vector<1x7x128xf32>
    %32 = vector.shape_cast %31 : vector<1x7x128xf32> to vector<7x128xf32>
    %33 = vector.extract_strided_slice %14 {offsets = [0, 128], sizes = [7, 128], strides = [1, 1]} : vector<8x256xf32> to vector<7x128xf32>
    %34 = arith.addf %32, %33 : vector<7x128xf32>
    %c0_25 = arith.constant 0 : index
    %c1_26 = arith.constant 1 : index
    %c0_27 = arith.constant 0 : index
    %35 = vector.load %arg8[%c0_25, %c1_26, %c0_27] : memref<1x8x128xf32, #tpu.memory_space<vmem>>, vector<1x7x128xf32>
    %36 = vector.shape_cast %35 : vector<1x7x128xf32> to vector<7x128xf32>
    %37 = vector.shape_cast %34 : vector<7x128xf32> to vector<1x7x128xf32>
    tpu.vector_store %arg8[%c0_25, %c1_26, %c0_27], %37 {strides = array<i32>} : memref<1x8x128xf32, #tpu.memory_space<vmem>>, vector<1x7x128xf32>,
    %c0_28 = arith.constant 0 : index
    %c1_29 = arith.constant 1 : index
    %c0_30 = arith.constant 0 : index
    %38 = vector.load %arg9[%c0_28, %c1_29, %c0_30] : memref<1x8x128xf32, #tpu.memory_space<vmem>>, vector<1x7x128xf32>
    %39 = vector.shape_cast %38 : vector<1x7x128xf32> to vector<7x128xf32>
    %40 = vector.extract_strided_slice %16 {offsets = [0, 128], sizes = [7, 128], strides = [1, 1]} : vector<8x256xf32> to vector<7x128xf32>
    %41 = arith.addf %39, %40 : vector<7x128xf32>
    %c0_31 = arith.constant 0 : index
    %c1_32 = arith.constant 1 : index
    %c0_33 = arith.constant 0 : index
    %42 = vector.load %arg9[%c0_31, %c1_32, %c0_33] : memref<1x8x128xf32, #tpu.memory_space<vmem>>, vector<1x7x128xf32>
    %43 = vector.shape_cast %42 : vector<1x7x128xf32> to vector<7x128xf32>
    %44 = vector.shape_cast %41 : vector<7x128xf32> to vector<1x7x128xf32>
    tpu.vector_store %arg9[%c0_31, %c1_32, %c0_33], %44 {strides = array<i32>} : memref<1x8x128xf32, #tpu.memory_space<vmem>>, vector<1x7x128xf32>,
    %c0_34 = arith.constant 0 : index
    %c0_35 = arith.constant 0 : index
    %c0_36 = arith.constant 0 : index
    %45 = vector.load %arg8[%c0_34, %c0_35, %c0_36] : memref<1x8x128xf32, #tpu.memory_space<vmem>>, vector<1x8x128xf32>
    %46 = vector.shape_cast %45 : vector<1x8x128xf32> to vector<8x128xf32>
    %c0_37 = arith.constant 0 : index
    %c0_38 = arith.constant 0 : index
    %c0_39 = arith.constant 0 : index
    %47 = vector.load %arg9[%c0_37, %c0_38, %c0_39] : memref<1x8x128xf32, #tpu.memory_space<vmem>>, vector<1x8x128xf32>
    %48 = vector.shape_cast %47 : vector<1x8x128xf32> to vector<8x128xf32>
    %cst_40 = arith.constant dense<0.000000e+00> : vector<128xf32>
    %49 = vector.multi_reduction <add>, %46, %cst_40 [0] : vector<8x128xf32> to vector<128xf32>
    %50 = vector.shape_cast %49 : vector<128xf32> to vector<1x128xf32>
    %c0_41 = arith.constant 0 : index
    %c0_42 = arith.constant 0 : index
    %c0_43 = arith.constant 0 : index
    %51 = vector.load %arg10[%c0_41, %c0_42, %c0_43] : memref<1x2x128xf32, #tpu.memory_space<vmem>>, vector<1x1x128xf32>
    %52 = vector.shape_cast %51 : vector<1x1x128xf32> to vector<1x128xf32>
    %53 = vector.shape_cast %50 : vector<1x128xf32> to vector<1x1x128xf32>
    tpu.vector_store %arg10[%c0_41, %c0_42, %c0_43], %53 {strides = array<i32>} : memref<1x2x128xf32, #tpu.memory_space<vmem>>, vector<1x1x128xf32>,
    %54 = arith.mulf %46, %46 : vector<8x128xf32>
    %cst_44 = arith.constant dense<0.000000e+00> : vector<128xf32>
    %55 = vector.multi_reduction <add>, %54, %cst_44 [0] : vector<8x128xf32> to vector<128xf32>
    %56 = vector.shape_cast %55 : vector<128xf32> to vector<1x128xf32>
    %c0_45 = arith.constant 0 : index
    %c1_46 = arith.constant 1 : index
    %c0_47 = arith.constant 0 : index
    %57 = vector.load %arg10[%c0_45, %c1_46, %c0_47] : memref<1x2x128xf32, #tpu.memory_space<vmem>>, vector<1x1x128xf32>
    %58 = vector.shape_cast %57 : vector<1x1x128xf32> to vector<1x128xf32>
    %59 = vector.shape_cast %56 : vector<1x128xf32> to vector<1x1x128xf32>
    tpu.vector_store %arg10[%c0_45, %c1_46, %c0_47], %59 {strides = array<i32>} : memref<1x2x128xf32, #tpu.memory_space<vmem>>, vector<1x1x128xf32>,
    %cst_48 = arith.constant dense<0.000000e+00> : vector<128xf32>
    %60 = vector.multi_reduction <add>, %48, %cst_48 [0] : vector<8x128xf32> to vector<128xf32>
    %61 = vector.shape_cast %60 : vector<128xf32> to vector<1x128xf32>
    %c0_49 = arith.constant 0 : index
    %c0_50 = arith.constant 0 : index
    %c0_51 = arith.constant 0 : index
    %62 = vector.load %arg11[%c0_49, %c0_50, %c0_51] : memref<1x2x128xf32, #tpu.memory_space<vmem>>, vector<1x1x128xf32>
    %63 = vector.shape_cast %62 : vector<1x1x128xf32> to vector<1x128xf32>
    %64 = vector.shape_cast %61 : vector<1x128xf32> to vector<1x1x128xf32>
    tpu.vector_store %arg11[%c0_49, %c0_50, %c0_51], %64 {strides = array<i32>} : memref<1x2x128xf32, #tpu.memory_space<vmem>>, vector<1x1x128xf32>,
    %65 = arith.mulf %48, %48 : vector<8x128xf32>
    %cst_52 = arith.constant dense<0.000000e+00> : vector<128xf32>
    %66 = vector.multi_reduction <add>, %65, %cst_52 [0] : vector<8x128xf32> to vector<128xf32>
    %67 = vector.shape_cast %66 : vector<128xf32> to vector<1x128xf32>
    %c0_53 = arith.constant 0 : index
    %c1_54 = arith.constant 1 : index
    %c0_55 = arith.constant 0 : index
    %68 = vector.load %arg11[%c0_53, %c1_54, %c0_55] : memref<1x2x128xf32, #tpu.memory_space<vmem>>, vector<1x1x128xf32>
    %69 = vector.shape_cast %68 : vector<1x1x128xf32> to vector<1x128xf32>
    %70 = vector.shape_cast %67 : vector<1x128xf32> to vector<1x1x128xf32>
    tpu.vector_store %arg11[%c0_53, %c1_54, %c0_55], %70 {strides = array<i32>} : memref<1x2x128xf32, #tpu.memory_space<vmem>>, vector<1x1x128xf32>,
    return
  }
  func.func @transform_0(%arg0: i32) -> (i32, i32, i32) {
    %c0_i32 = arith.constant 0 : i32
    %c0_i32_0 = arith.constant 0 : i32
    %c0_i32_1 = arith.constant 0 : i32
    return %arg0, %c0_i32, %c0_i32_0 : i32, i32, i32
  }
  func.func @transform_1(%arg0: i32) -> (i32, i32) {
    %c0_i32 = arith.constant 0 : i32
    %c0_i32_0 = arith.constant 0 : i32
    %c0_i32_1 = arith.constant 0 : i32
    return %c0_i32, %c0_i32_0 : i32, i32
  }
  func.func @transform_2(%arg0: i32) -> (i32, i32) {
    %c0_i32 = arith.constant 0 : i32
    %c0_i32_0 = arith.constant 0 : i32
    %c0_i32_1 = arith.constant 0 : i32
    return %c0_i32, %c0_i32_0 : i32, i32
  }
  func.func @transform_3(%arg0: i32) -> (i32, i32) {
    %c0_i32 = arith.constant 0 : i32
    %c0_i32_0 = arith.constant 0 : i32
    %c0_i32_1 = arith.constant 0 : i32
    return %c0_i32, %c0_i32_0 : i32, i32
  }
  func.func @transform_4(%arg0: i32) -> (i32, i32) {
    %c0_i32 = arith.constant 0 : i32
    %c0_i32_0 = arith.constant 0 : i32
    %c0_i32_1 = arith.constant 0 : i32
    return %c0_i32, %c0_i32_0 : i32, i32
  }
  func.func @transform_5(%arg0: i32) -> (i32, i32) {
    %c0_i32 = arith.constant 0 : i32
    %c0_i32_0 = arith.constant 0 : i32
    %c0_i32_1 = arith.constant 0 : i32
    return %c0_i32, %c0_i32_0 : i32, i32
  }
  func.func @transform_6(%arg0: i32) -> (i32, i32) {
    %c0_i32 = arith.constant 0 : i32
    %c0_i32_0 = arith.constant 0 : i32
    %c0_i32_1 = arith.constant 0 : i32
    return %c0_i32, %c0_i32_0 : i32, i32
  }
  func.func @transform_7(%arg0: i32) -> (i32, i32, i32) {
    %c0_i32 = arith.constant 0 : i32
    %c0_i32_0 = arith.constant 0 : i32
    %c0_i32_1 = arith.constant 0 : i32
    return %arg0, %c0_i32, %c0_i32_0 : i32, i32, i32
  }
  func.func @transform_8(%arg0: i32) -> (i32, i32, i32) {
    %c0_i32 = arith.constant 0 : i32
    %c0_i32_0 = arith.constant 0 : i32
    %c0_i32_1 = arith.constant 0 : i32
    return %arg0, %c0_i32, %c0_i32_0 : i32, i32, i32
  }
  func.func @transform_9(%arg0: i32) -> (i32, i32, i32) {
    %c0_i32 = arith.constant 0 : i32
    %c0_i32_0 = arith.constant 0 : i32
    %c0_i32_1 = arith.constant 0 : i32
    return %arg0, %c0_i32, %c0_i32_0 : i32, i32, i32
  }
  func.func @transform_10(%arg0: i32) -> (i32, i32, i32) {
    %c0_i32 = arith.constant 0 : i32
    %c0_i32_0 = arith.constant 0 : i32
    %c0_i32_1 = arith.constant 0 : i32
    return %arg0, %c0_i32, %c0_i32_0 : i32, i32, i32
  }
}

module attributes {stable_mosaic.version = 11 : i64} {
  func.func @_stage2_kernel(%arg0: i32, %arg1: memref<1x8x128xf32, #tpu.memory_space<vmem>>, %arg2: memref<1x8x128xf32, #tpu.memory_space<vmem>>, %arg3: memref<1x128xf32, #tpu.memory_space<vmem>>, %arg4: memref<1x128xf32, #tpu.memory_space<vmem>>, %arg5: memref<128x384xf32, #tpu.memory_space<vmem>>, %arg6: memref<1x128xf32, #tpu.memory_space<vmem>>, %arg7: memref<1x128xf32, #tpu.memory_space<vmem>>, %arg8: memref<1x128xf32, #tpu.memory_space<vmem>>, %arg9: memref<1x8x128xf32, #tpu.memory_space<vmem>>) attributes {dimension_semantics = [#tpu.dimension_semantics<parallel>], iteration_bounds = array<i64: 2>, scalar_prefetch = 0 : i64, scratch_operands = 0 : i64, tpu.core_type = #tpu.core_type<tc>, window_params = [{transform_indices = @transform_0, window_bounds = array<i64: 1, 8, 128>}, {transform_indices = @transform_1, window_bounds = array<i64: 1, 8, 128>}, {pipeline_mode = #tpu.pipeline_mode<synchronous>, transform_indices = @transform_2, window_bounds = array<i64: 1, 128>}, {pipeline_mode = #tpu.pipeline_mode<synchronous>, transform_indices = @transform_3, window_bounds = array<i64: 1, 128>}, {pipeline_mode = #tpu.pipeline_mode<synchronous>, transform_indices = @transform_4, window_bounds = array<i64: 128, 384>}, {pipeline_mode = #tpu.pipeline_mode<synchronous>, transform_indices = @transform_5, window_bounds = array<i64: 1, 128>}, {pipeline_mode = #tpu.pipeline_mode<synchronous>, transform_indices = @transform_6, window_bounds = array<i64: 1, 128>}, {pipeline_mode = #tpu.pipeline_mode<synchronous>, transform_indices = @transform_7, window_bounds = array<i64: 1, 128>}, {transform_indices = @transform_8, window_bounds = array<i64: 1, 8, 128>}]} {
    %c0 = arith.constant 0 : index
    %c0_0 = arith.constant 0 : index
    %c0_1 = arith.constant 0 : index
    %0 = vector.load %arg1[%c0, %c0_0, %c0_1] : memref<1x8x128xf32, #tpu.memory_space<vmem>>, vector<1x8x128xf32>
    %1 = vector.shape_cast %0 : vector<1x8x128xf32> to vector<8x128xf32>
    %c0_2 = arith.constant 0 : index
    %c0_3 = arith.constant 0 : index
    %2 = vector.load %arg3[%c0_2, %c0_3] : memref<1x128xf32, #tpu.memory_space<vmem>>, vector<1x128xf32>
    %3 = vector.broadcast %2 : vector<1x128xf32> to vector<8x128xf32>
    %4 = arith.mulf %1, %3 : vector<8x128xf32>
    %c0_4 = arith.constant 0 : index
    %c0_5 = arith.constant 0 : index
    %5 = vector.load %arg4[%c0_4, %c0_5] : memref<1x128xf32, #tpu.memory_space<vmem>>, vector<1x128xf32>
    %6 = vector.broadcast %5 : vector<1x128xf32> to vector<8x128xf32>
    %7 = arith.addf %4, %6 : vector<8x128xf32>
    %cst = arith.constant 0.000000e+00 : f32
    %8 = vector.broadcast %cst : f32 to vector<8x128xf32>
    %9 = arith.cmpf oge, %7, %8 : vector<8x128xf32>
    %cst_6 = arith.constant 2.000000e-01 : f32
    %10 = vector.broadcast %cst_6 : f32 to vector<8x128xf32>
    %11 = arith.mulf %10, %7 : vector<8x128xf32>
    %12 = arith.select %9, %7, %11 : vector<8x128xi1>, vector<8x128xf32>
    %c0_7 = arith.constant 0 : index
    %c0_8 = arith.constant 0 : index
    %13 = vector.load %arg5[%c0_7, %c0_8] : memref<128x384xf32, #tpu.memory_space<vmem>>, vector<128x384xf32>
    %cst_9 = arith.constant dense<0.000000e+00> : vector<8x384xf32>
    %14 = tpu.matmul %12, %13, %cst_9 {dimension_numbers = #tpu.dot_dimension_numbers<[1], [0], [0], [1], [0, 0, 1, 1], [], []>} : vector<8x128xf32>, vector<128x384xf32>, vector<8x384xf32> -> vector<8x384xf32>
    %c0_10 = arith.constant 0 : index
    %c0_11 = arith.constant 0 : index
    %c0_12 = arith.constant 0 : index
    %15 = vector.load %arg2[%c0_10, %c0_11, %c0_12] : memref<1x8x128xf32, #tpu.memory_space<vmem>>, vector<1x8x128xf32>
    %16 = vector.shape_cast %15 : vector<1x8x128xf32> to vector<8x128xf32>
    %c0_13 = arith.constant 0 : index
    %c0_14 = arith.constant 0 : index
    %17 = vector.load %arg7[%c0_13, %c0_14] : memref<1x128xf32, #tpu.memory_space<vmem>>, vector<1x128xf32>
    %18 = vector.broadcast %17 : vector<1x128xf32> to vector<8x128xf32>
    %19 = arith.mulf %16, %18 : vector<8x128xf32>
    %c0_15 = arith.constant 0 : index
    %c0_16 = arith.constant 0 : index
    %20 = vector.load %arg8[%c0_15, %c0_16] : memref<1x128xf32, #tpu.memory_space<vmem>>, vector<1x128xf32>
    %21 = vector.broadcast %20 : vector<1x128xf32> to vector<8x128xf32>
    %22 = arith.addf %19, %21 : vector<8x128xf32>
    %23 = vector.extract_strided_slice %14 {offsets = [0, 128], sizes = [8, 128], strides = [1, 1]} : vector<8x384xf32> to vector<8x128xf32>
    %c0_17 = arith.constant 0 : index
    %c0_18 = arith.constant 0 : index
    %24 = vector.load %arg6[%c0_17, %c0_18] : memref<1x128xf32, #tpu.memory_space<vmem>>, vector<1x128xf32>
    %25 = vector.broadcast %24 : vector<1x128xf32> to vector<8x128xf32>
    %26 = arith.addf %23, %25 : vector<8x128xf32>
    %27 = arith.addf %26, %22 : vector<8x128xf32>
    %c0_19 = arith.constant 0 : index
    %c0_20 = arith.constant 0 : index
    %c0_21 = arith.constant 0 : index
    %28 = vector.load %arg9[%c0_19, %c0_20, %c0_21] : memref<1x8x128xf32, #tpu.memory_space<vmem>>, vector<1x8x128xf32>
    %29 = vector.shape_cast %28 : vector<1x8x128xf32> to vector<8x128xf32>
    %30 = vector.shape_cast %27 : vector<8x128xf32> to vector<1x8x128xf32>
    tpu.vector_store %arg9[%c0_19, %c0_20, %c0_21], %30 {strides = array<i32>} : memref<1x8x128xf32, #tpu.memory_space<vmem>>, vector<1x8x128xf32>,
    %c0_22 = arith.constant 0 : index
    %c1 = arith.constant 1 : index
    %c0_23 = arith.constant 0 : index
    %31 = vector.load %arg9[%c0_22, %c1, %c0_23] : memref<1x8x128xf32, #tpu.memory_space<vmem>>, vector<1x7x128xf32>
    %32 = vector.shape_cast %31 : vector<1x7x128xf32> to vector<7x128xf32>
    %33 = vector.extract_strided_slice %14 {offsets = [0, 0], sizes = [7, 128], strides = [1, 1]} : vector<8x384xf32> to vector<7x128xf32>
    %34 = arith.addf %32, %33 : vector<7x128xf32>
    %c0_24 = arith.constant 0 : index
    %c1_25 = arith.constant 1 : index
    %c0_26 = arith.constant 0 : index
    %35 = vector.load %arg9[%c0_24, %c1_25, %c0_26] : memref<1x8x128xf32, #tpu.memory_space<vmem>>, vector<1x7x128xf32>
    %36 = vector.shape_cast %35 : vector<1x7x128xf32> to vector<7x128xf32>
    %37 = vector.shape_cast %34 : vector<7x128xf32> to vector<1x7x128xf32>
    tpu.vector_store %arg9[%c0_24, %c1_25, %c0_26], %37 {strides = array<i32>} : memref<1x8x128xf32, #tpu.memory_space<vmem>>, vector<1x7x128xf32>,
    %c0_27 = arith.constant 0 : index
    %c0_28 = arith.constant 0 : index
    %c0_29 = arith.constant 0 : index
    %38 = vector.load %arg9[%c0_27, %c0_28, %c0_29] : memref<1x8x128xf32, #tpu.memory_space<vmem>>, vector<1x7x128xf32>
    %39 = vector.shape_cast %38 : vector<1x7x128xf32> to vector<7x128xf32>
    %40 = vector.extract_strided_slice %14 {offsets = [1, 256], sizes = [7, 128], strides = [1, 1]} : vector<8x384xf32> to vector<7x128xf32>
    %41 = arith.addf %39, %40 : vector<7x128xf32>
    %c0_30 = arith.constant 0 : index
    %c0_31 = arith.constant 0 : index
    %c0_32 = arith.constant 0 : index
    %42 = vector.load %arg9[%c0_30, %c0_31, %c0_32] : memref<1x8x128xf32, #tpu.memory_space<vmem>>, vector<1x7x128xf32>
    %43 = vector.shape_cast %42 : vector<1x7x128xf32> to vector<7x128xf32>
    %44 = vector.shape_cast %41 : vector<7x128xf32> to vector<1x7x128xf32>
    tpu.vector_store %arg9[%c0_30, %c0_31, %c0_32], %44 {strides = array<i32>} : memref<1x8x128xf32, #tpu.memory_space<vmem>>, vector<1x7x128xf32>,
    return
  }
  func.func @transform_0(%arg0: i32) -> (i32, i32, i32) {
    %c0_i32 = arith.constant 0 : i32
    %c0_i32_0 = arith.constant 0 : i32
    %c0_i32_1 = arith.constant 0 : i32
    return %arg0, %c0_i32, %c0_i32_0 : i32, i32, i32
  }
  func.func @transform_1(%arg0: i32) -> (i32, i32, i32) {
    %c0_i32 = arith.constant 0 : i32
    %c0_i32_0 = arith.constant 0 : i32
    %c0_i32_1 = arith.constant 0 : i32
    return %arg0, %c0_i32, %c0_i32_0 : i32, i32, i32
  }
  func.func @transform_2(%arg0: i32) -> (i32, i32) {
    %c0_i32 = arith.constant 0 : i32
    %c0_i32_0 = arith.constant 0 : i32
    %c0_i32_1 = arith.constant 0 : i32
    return %c0_i32, %c0_i32_0 : i32, i32
  }
  func.func @transform_3(%arg0: i32) -> (i32, i32) {
    %c0_i32 = arith.constant 0 : i32
    %c0_i32_0 = arith.constant 0 : i32
    %c0_i32_1 = arith.constant 0 : i32
    return %c0_i32, %c0_i32_0 : i32, i32
  }
  func.func @transform_4(%arg0: i32) -> (i32, i32) {
    %c0_i32 = arith.constant 0 : i32
    %c0_i32_0 = arith.constant 0 : i32
    %c0_i32_1 = arith.constant 0 : i32
    return %c0_i32, %c0_i32_0 : i32, i32
  }
  func.func @transform_5(%arg0: i32) -> (i32, i32) {
    %c0_i32 = arith.constant 0 : i32
    %c0_i32_0 = arith.constant 0 : i32
    %c0_i32_1 = arith.constant 0 : i32
    return %c0_i32, %c0_i32_0 : i32, i32
  }
  func.func @transform_6(%arg0: i32) -> (i32, i32) {
    %c0_i32 = arith.constant 0 : i32
    %c0_i32_0 = arith.constant 0 : i32
    %c0_i32_1 = arith.constant 0 : i32
    return %c0_i32, %c0_i32_0 : i32, i32
  }
  func.func @transform_7(%arg0: i32) -> (i32, i32) {
    %c0_i32 = arith.constant 0 : i32
    %c0_i32_0 = arith.constant 0 : i32
    %c0_i32_1 = arith.constant 0 : i32
    return %c0_i32, %c0_i32_0 : i32, i32
  }
  func.func @transform_8(%arg0: i32) -> (i32, i32, i32) {
    %c0_i32 = arith.constant 0 : i32
    %c0_i32_0 = arith.constant 0 : i32
    %c0_i32_1 = arith.constant 0 : i32
    return %arg0, %c0_i32, %c0_i32_0 : i32, i32, i32
  }
}

</mosaic_0001>

<bundles_post_ra>
// kernel: tile.48
= control target key start
LH: loop header
LB: loop body
LE: loop exit
PB: predicated region body
PF: predicated region fallthrough
CT: control target
= control target key end

     0   :  { %s40_s0 = inlined_call_operand.vmem [shape: f32[8], index: 0, kind: input, shape index: {}]   ;;  %s41_s1 = inlined_call_operand.vmem [shape: f32[32,8], index: 1, kind: output, shape index: {}]  }
   0x1   :  { %v4_v0 = vld [vmem:[%s40_s0] ss:$0 sm:$0xff] }
   0x2   :  { %5 = vst [vmem:[%s41_s1] sm:$0xff] %v4_v0  ;;  %12 = vst [vmem:[%s41_s1 + $0x8] sm:$0xff] %v4_v0 }
   0x3   :  { %13 = vst [vmem:[%s41_s1 + $0x10] sm:$0xff] %v4_v0  ;;  %14 = vst [vmem:[%s41_s1 + $0x18] sm:$0xff] %v4_v0 }

// kernel: tile.49
= control target key start
LH: loop header
LB: loop body
LE: loop exit
PB: predicated region body
PF: predicated region fallthrough
CT: control target
= control target key end

     0   :  { %s7_s6 = smov 3  ;;  %s21_s9 = smov 3  ;;  %vm4_vm0 = vcmask 64512   ;;  %vm11_vm1 = vcmask 1048512   ;;  %vm18_vm2 = vcmask 982912   ;;  %vm25_vm3 = vcmask 917312   ;;  %s232_s0 = inlined_call_operand.vmem [shape: f32[32,8], index: 0, kind: input, shape index: {}]   ;;  %s233_s1 = inlined_call_operand.vmem [shape: f32[1,256], index: 1, kind: output, shape index: {}]  }
   0x1   :  { %v122_v0 = vld [vmem:[%s232_s0 + $0xf] ss:$16 sm:%s7_s6]   ;;  %s153_s10 = smov 120   ;;  %v124_v1 = vld [vmem:[%s232_s0 + $0xd] ss:$16 sm:%s21_s9]   ;;  %s14_s13 = smov 3 }
   0x2   :  { %9 = vrot.lane.b32.xlu0 %v122_v0, %s153_s10  ;;  %s154_s14 = smov 104   ;;  %v123_v2 = vld [vmem:[%s232_s0 + $0xe] ss:$16 sm:%s14_s13]   ;;  %s28_s17 = smov 3  ;;  %vm32_vm4 = vcmask 851712   ;;  %vm39_vm5 = vcmask 786112  }
   0x3   :  { %23 = vrot.lane.b32.xlu1 %v124_v1, %s154_s14  ;;  %v125_v3 = vld [vmem:[%s232_s0 + $0xc] ss:$16 sm:%s28_s17]   ;;  %s35_s20 = smov 3  ;;  %s42_s21 = smov 3  ;;  %vm46_vm6 = vcmask 720512   ;;  %vm53_vm7 = vcmask 654912  }
   0x4   :  { %s155_s22 = smov 112   ;;  %s156_s23 = smov 96   ;;  %v126_v4 = vld [vmem:[%s232_s0 + $0xb] ss:$16 sm:%s35_s20]   ;;  %v127_v5 = vld [vmem:[%s232_s0 + $0xa] ss:$16 sm:%s42_s21]  }
   0x5   :  { %s49_s28 = smov 3  ;;  %s56_s29 = smov 3  ;;  %vm60_vm8 = vcmask 589312   ;;  %vm67_vm9 = vcmask 523712   ;;  %vm74_vm10 = vcmask 458112   ;;  %vm81_vm11 = vcmask 392512  }
   0x6   :  { %16 = vrot.lane.b32.xlu0 %v123_v2, %s155_s22  ;;  %s157_s30 = smov 88   ;;  %s158_s2 = smov 80   ;;  %v128_v6 = vld [vmem:[%s232_s0 + $0x9] ss:$16 sm:%s49_s28]   ;;  %vm88_vm12 = vcmask 326912   ;;  %vm95_vm13 = vcmask 261312  }
   0x7   :  { %30 = vrot.lane.b32.xlu1 %v125_v3, %s156_s23  ;;  %v129_v7 = vld [vmem:[%s232_s0 + $0x8] ss:$16 sm:%s56_s29]   ;;  %s63_s7 = smov 3  ;;  %s70_s8 = smov 3  ;;  %vm102_vm14 = vcmask 195712   ;;  %vm109_vm15 = vcmask 130112  }
   0x8   :  { %s159_s9 = smov 72   ;;  %s160_s10 = smov 64   ;;  %v130_v8 = vld [vmem:[%s232_s0 + $0x7] ss:$16 sm:%s63_s7]   ;;  %v131_v9 = vld [vmem:[%s232_s0 + $0x6] ss:$16 sm:%s70_s8]  }
   0x9   :  { %s2_s13 = smov 3  ;;  %s77_s16 = smov 3 }
   0xa   :  { %37 = vrot.lane.b32.xlu0 %v126_v4, %s157_s30  ;;  %v3_v10 = vld [vmem:[%s232_s0] ss:$16 sm:%s2_s13]   ;;  %s84_s19 = smov 3  ;;  %s161_s20 = smov 56  }
   0xb   :  { %44 = vrot.lane.b32.xlu1 %v127_v5, %s158_s2  ;;  %5 = vst.msk [vmem:[#allocation0] ss:$8 sm:$0x3] %vm4_vm0, %v3_v10   ;;  %s162_s21 = smov 48   ;;  %v132_v11 = vld [vmem:[%s232_s0 + $0x5] ss:$16 sm:%s77_s16]  }
   0xc   :  { %v133_v12 = vld [vmem:[%s232_s0 + $0x4] ss:$16 sm:%s84_s19]   ;;  %s91_s26 = smov 3  ;;  %s98_s27 = smov 3 }
   0xd   :  { %s163_s28 = smov 40   ;;  %s164_s29 = smov 32   ;;  %v134_v13 = vld [vmem:[%s232_s0 + $0x3] ss:$16 sm:%s91_s26]   ;;  %v135_v14 = vld [vmem:[%s232_s0 + $0x2] ss:$16 sm:%s98_s27]  }
   0xe   :  { %51 = vrot.lane.b32.xlu0 %v128_v6, %s159_s9  ;;  %s105_s5 = smov 3  ;;  %s165_s6 = smov 24  }
   0xf   :  { %58 = vrot.lane.b32.xlu1 %v129_v7, %s160_s10  ;;  %s166_s7 = smov 16   ;;  %v136_v15 = vld [vmem:[%s232_s0 + $0x1] ss:$16 sm:%s105_s5]   ;;  %s167_s0 = smov 8  }
  0x12   :  { %65 = vrot.lane.b32.xlu0 %v130_v8, %s161_s20 }
  0x13   :  { %72 = vrot.lane.b32.xlu1 %v131_v9, %s162_s21 }
  0x16   :  { %79 = vrot.lane.b32.xlu0 %v132_v11, %s163_s28 }
  0x17   :  { %86 = vrot.lane.b32.xlu1 %v133_v12, %s164_s29 }
  0x1a   :  { %93 = vrot.lane.b32.xlu0 %v134_v13, %s165_s6 }
  0x1b   :  { %100 = vrot.lane.b32.xlu1 %v135_v14, %s166_s7 }
  0x1e   :  { %107 = vrot.lane.b32.xlu0 %v136_v15, %s167_s0 }
  0x74   :  { %v10_v16 = vpop.permute.xlu0 %9  }
  0x75   :  { %12 = vst.msk [vmem:[#allocation0] ss:$8 sm:$0x3] %vm11_vm1, %v10_v16   ;;  %v24_v17 = vpop.permute.xlu1 %23  }
  0x78   :  { %v17_v18 = vpop.permute.xlu0 %16  }
  0x79   :  { %19 = vst.msk [vmem:[#allocation0] ss:$8 sm:$0x3] %vm18_vm2, %v17_v18   ;;  %v31_v19 = vpop.permute.xlu1 %30  }
  0x7a   :  { %26 = vst.msk [vmem:[#allocation0] ss:$8 sm:$0x3] %vm25_vm3, %v24_v17  }
  0x7b   :  { %33 = vst.msk [vmem:[#allocation0] ss:$8 sm:$0x3] %vm32_vm4, %v31_v19  }
  0x7c   :  { %v38_v20 = vpop.permute.xlu0 %37  }
  0x7d   :  { %40 = vst.msk [vmem:[#allocation0] ss:$8 sm:$0x3] %vm39_vm5, %v38_v20   ;;  %v45_v21 = vpop.permute.xlu1 %44  }
  0x7e   :  { %47 = vst.msk [vmem:[#allocation0] ss:$8 sm:$0x3] %vm46_vm6, %v45_v21  }
  0x80   :  { %v52_v22 = vpop.permute.xlu0 %51  }
  0x81   :  { %54 = vst.msk [vmem:[#allocation0] ss:$8 sm:$0x3] %vm53_vm7, %v52_v22   ;;  %v59_v23 = vpop.permute.xlu1 %58  }
  0x82   :  { %61 = vst.msk [vmem:[#allocation0] ss:$8 sm:$0x3] %vm60_vm8, %v59_v23  }
  0x84   :  { %v66_v24 = vpop.permute.xlu0 %65  }
  0x85   :  { %68 = vst.msk [vmem:[#allocation0] ss:$8 sm:$0x3] %vm67_vm9, %v66_v24   ;;  %v73_v25 = vpop.permute.xlu1 %72  }
  0x86   :  { %75 = vst.msk [vmem:[#allocation0] ss:$8 sm:$0x3] %vm74_vm10, %v73_v25  }
  0x88   :  { %v80_v26 = vpop.permute.xlu0 %79  }
  0x89   :  { %82 = vst.msk [vmem:[#allocation0] ss:$8 sm:$0x3] %vm81_vm11, %v80_v26   ;;  %v87_v27 = vpop.permute.xlu1 %86  }
  0x8a   :  { %89 = vst.msk [vmem:[#allocation0] ss:$8 sm:$0x3] %vm88_vm12, %v87_v27  }
  0x8c   :  { %v94_v28 = vpop.permute.xlu0 %93  }
  0x8d   :  { %96 = vst.msk [vmem:[#allocation0] ss:$8 sm:$0x3] %vm95_vm13, %v94_v28   ;;  %v101_v29 = vpop.permute.xlu1 %100  }
  0x8e   :  { %103 = vst.msk [vmem:[#allocation0] ss:$8 sm:$0x3] %vm102_vm14, %v101_v29  }
  0x90   :  { %v108_v30 = vpop.permute.xlu0 %107  }
  0x91   :  { %110 = vst.msk [vmem:[#allocation0] ss:$8 sm:$0x3] %vm109_vm15, %v108_v30  }
  0x98   :  { %v114_v31 = vld [vmem:[#allocation0] sm:$0x1]  ;;  %v118_v32 = vld [vmem:[#allocation0 + $0x8] sm:$0x1] }
  0x99   :  { %116 = vst [vmem:[%s233_s1] sm:$0x1] %v114_v31  ;;  %137 = vst [vmem:[%s233_s1 + $0x1] sm:$0x1] %v118_v32 }

// kernel: tile.58
= control target key start
LH: loop header
LB: loop body
LE: loop exit
PB: predicated region body
PF: predicated region fallthrough
CT: control target
= control target key end

     0   :  { %s22_s0 = inlined_call_operand.vmem [shape: f32[16], index: 0, kind: input, shape index: {}]   ;;  %s23_s1 = inlined_call_operand.vmem [shape: f32[8,16], index: 1, kind: output, shape index: {}]  }
   0x1   :  { %v4_v0 = vld [vmem:[%s22_s0] ss:$0 sm:$0xff] }
   0x2   :  { %5 = vst [vmem:[%s23_s1] sm:$0xff] %v4_v0 }

// kernel: tile.59
= control target key start
LH: loop header
LB: loop body
LE: loop exit
PB: predicated region body
PF: predicated region fallthrough
CT: control target
= control target key end

     0   :  { %s67_s10 = smov 112   ;;  %s68_s11 = smov 80   ;;  %vm3_vm0 = vcmask 130048   ;;  %vm9_vm1 = vcmask 1048448   ;;  %vm15_vm2 = vcmask 917248   ;;  %vm21_vm3 = vcmask 786048   ;;  %s111_s0 = inlined_call_operand.vmem [shape: f32[8,16], index: 0, kind: input, shape index: {}]   ;;  %s112_s1 = inlined_call_operand.vmem [shape: f32[1,128], index: 1, kind: output, shape index: {}]  }
   0x1   :  { %v53_v0 = vld [vmem:[%s111_s0 + $0x7] sm:$0x1]   ;;  %v55_v1 = vld [vmem:[%s111_s0 + $0x5] sm:$0x1]   ;;  %v54_v2 = vld [vmem:[%s111_s0 + $0x6] sm:$0x1]  }
   0x2   :  { %7 = vrot.lane.b32.xlu0 %v53_v0, %s67_s10  ;;  %19 = vrot.lane.b32.xlu1 %v55_v1, %s68_s11  ;;  %v56_v3 = vld [vmem:[%s111_s0 + $0x4] sm:$0x1]   ;;  %v2_v4 = vld [vmem:[%s111_s0] sm:$0x1]   ;;  %s69_s18 = smov 96   ;;  %s70_s19 = smov 64  }
   0x3   :  { %4 = vst.msk [vmem:[#allocation0] sm:$0x1] %vm3_vm0, %v2_v4   ;;  %v57_v5 = vld [vmem:[%s111_s0 + $0x3] sm:$0x1]   ;;  %v58_v6 = vld [vmem:[%s111_s0 + $0x2] sm:$0x1]  }
   0x4   :  { %s71_s24 = smov 48   ;;  %s72_s25 = smov 32   ;;  %v59_v7 = vld [vmem:[%s111_s0 + $0x1] sm:$0x1]   ;;  %vm27_vm4 = vcmask 654848   ;;  %vm33_vm5 = vcmask 523648  }
   0x5   :  { %s73_s0 = smov 16   ;;  %vm39_vm6 = vcmask 392448   ;;  %vm45_vm7 = vcmask 261248  }
   0x6   :  { %13 = vrot.lane.b32.xlu0 %v54_v2, %s69_s18  ;;  %25 = vrot.lane.b32.xlu1 %v56_v3, %s70_s19 }
   0xa   :  { %31 = vrot.lane.b32.xlu0 %v57_v5, %s71_s24  ;;  %37 = vrot.lane.b32.xlu1 %v58_v6, %s72_s25 }
   0xe   :  { %43 = vrot.lane.b32.xlu0 %v59_v7, %s73_s0 }
  0x74   :  { %v8_v8 = vpop.permute.xlu0 %7   ;;  %v20_v9 = vpop.permute.xlu1 %19  }
  0x75   :  { %10 = vst.msk [vmem:[#allocation0] sm:$0x1] %vm9_vm1, %v8_v8  }
  0x78   :  { %v14_v10 = vpop.permute.xlu0 %13   ;;  %v26_v11 = vpop.permute.xlu1 %25  }
  0x79   :  { %16 = vst.msk [vmem:[#allocation0] sm:$0x1] %vm15_vm2, %v14_v10  }
  0x7a   :  { %22 = vst.msk [vmem:[#allocation0] sm:$0x1] %vm21_vm3, %v20_v9  }
  0x7b   :  { %28 = vst.msk [vmem:[#allocation0] sm:$0x1] %vm27_vm4, %v26_v11  }
  0x7c   :  { %v32_v12 = vpop.permute.xlu0 %31   ;;  %v38_v13 = vpop.permute.xlu1 %37  }
  0x7d   :  { %34 = vst.msk [vmem:[#allocation0] sm:$0x1] %vm33_vm5, %v32_v12  }
  0x7e   :  { %40 = vst.msk [vmem:[#allocation0] sm:$0x1] %vm39_vm6, %v38_v13  }
  0x80   :  { %v44_v14 = vpop.permute.xlu0 %43  }
  0x81   :  { %46 = vst.msk [vmem:[#allocation0] sm:$0x1] %vm45_vm7, %v44_v14  }
  0x88   :  { %v50_v15 = vld [vmem:[#allocation0] sm:$0x1] }
  0x89   :  { %52 = vst [vmem:[%s112_s1] sm:$0x1] %v50_v15 }

// kernel: residual_conv_forward.2
= control target key start
LH: loop header
LB: loop body
LE: loop exit
PB: predicated region body
PF: predicated region fallthrough
CT: control target
= control target key end

     0   :  { %s1112_s13 = smov 0   ;;  %s1557_s0 = inlined_call_operand.vmem [shape: f32[2,8,256], index: 0, kind: input, shape index: {}]   ;;  %s1558_s1 = inlined_call_operand.vmem [shape: f32[1,256], index: 1, kind: input, shape index: {}]   ;;  %s1559_s2 = inlined_call_operand.vmem [shape: f32[1,256], index: 2, kind: input, shape index: {}]   ;;  %s1560_s3 = inlined_call_operand.vmem [shape: f32[256,256], index: 3, kind: input, shape index: {}]   ;;  %s1561_s4 = inlined_call_operand.vmem [shape: f32[1,128], index: 4, kind: input, shape index: {}]   ;;  %s1562_s5 = inlined_call_operand.vmem [shape: f32[256,256], index: 5, kind: input, shape index: {}]   ;;  %s1563_s6 = inlined_call_operand.vmem [shape: f32[1,128], index: 6, kind: input, shape index: {}]   ;;  %s1564_s7 = inlined_call_operand.vmem [shape: f32[2,8,128], index: 7, kind: output, shape index: {0}]   ;;  %s1565_s8 = inlined_call_operand.vmem [shape: f32[2,8,128], index: 8, kind: output, shape index: {1}]   ;;  %s1566_s9 = inlined_call_operand.vmem [shape: f32[2,2,128], index: 9, kind: output, shape index: {2}]   ;;  %s1567_s10 = inlined_call_operand.vmem [shape: f32[2,2,128], index: 10, kind: output, shape index: {3}]  }
   0x1 LB: > { %s897_s14 = sadd.s32 4294967295, %s1055_s13   ;;  %p901_p0 = scmp.ge.s32.totalorder %s1055_s13, 1  ;;  %s1055_s13 = sphi %s1112_s13, %s21_s13  }
   0x2   : > { %p319_p1 = scmp.lt.s32.totalorder %s1055_s13, 3 }
   0x4   : > { %p320_p2 = pnand %p901_p0, %p319_p1 }
   0x5   : > { %v426_v0 = vld [vmem:[%s1560_s3 + $0x8] sm:$0xff] (!%p320_p2)  ;;  %v428_v1 = vld [vmem:[%s1560_s3 + $0x18] sm:$0xff] (!%p320_p2)  ;;  %v425_v5 = vld [vmem:[%s1560_s3] sm:$0xff] (!%p320_p2)  ;;  %p1326_p3 = scmp.lt.s32.totalorder (!%p320_p2), %s897_s14, 1 }
   0x6   : > { %323 = sbr.rel (%p320_p2) target bundleno = 320 (0x140), region = 48  ;;  %v561_v2 = vld [vmem:[%s1562_s5 + $0x8] sm:$0xff] (!%p320_p2)  ;;  %v913_v3 = vpack.c.bf16 (!%p320_p2), %v428_v1, %v426_v0  ;;  %v563_v4 = vld [vmem:[%s1562_s5 + $0x18] sm:$0xff] (!%p320_p2)  ;;  %v427_v6 = vld [vmem:[%s1560_s3 + $0x10] sm:$0xff] (!%p320_p2) }
   0x7   : > { %v977_v7 = vpack.c.bf16 (!%p320_p2), %v563_v4, %v561_v2  ;;  %v915_v8 = vpack.c.bf16 (!%p320_p2), %v427_v6, %v425_v5  ;;  %v560_v9 = vld [vmem:[%s1562_s5] sm:$0xff] (!%p320_p2)  ;;  %v562_v10 = vld [vmem:[%s1562_s5 + $0x10] sm:$0xff] (!%p320_p2)  ;;  %v430_v11 = vld [vmem:[%s1560_s3 + $0x28] sm:$0xff] (!%p320_p2) }
   0x8   : > { %914 = vmatprep.subr.bf16.mxu0 (!%p320_p2), %v913_v3  ;;  %v979_v12 = vpack.c.bf16 (!%p320_p2), %v562_v10, %v560_v9  ;;  %v432_v13 = vld [vmem:[%s1560_s3 + $0x38] sm:$0xff] (!%p320_p2)  ;;  %v565_v14 = vld [vmem:[%s1562_s5 + $0x28] sm:$0xff] (!%p320_p2)  ;;  %v429_v18 = vld [vmem:[%s1560_s3 + $0x20] sm:$0xff] (!%p320_p2) }
   0x9   : > { %v567_v15 = vld [vmem:[%s1562_s5 + $0x38] sm:$0xff] (!%p320_p2)  ;;  %978 = vmatprep.subr.bf16.mxu1 (!%p320_p2), %v977_v7  ;;  %916 = vmatpush1.bf16.msra.mxu0 (!%p320_p2), %v915_v8  ;;  %v917_v16 = vpack.c.bf16 (!%p320_p2), %v432_v13, %v430_v11  ;;  %v431_v19 = vld [vmem:[%s1560_s3 + $0x30] sm:$0xff] (!%p320_p2)  ;;  %v564_v20 = vld [vmem:[%s1562_s5 + $0x20] sm:$0xff] (!%p320_p2) }
   0xa   : > { %v981_v17 = vpack.c.bf16 (!%p320_p2), %v567_v15, %v565_v14  ;;  %980 = vmatpush1.bf16.msra.mxu1 (!%p320_p2), %v979_v12  ;;  %v919_v21 = vpack.c.bf16 (!%p320_p2), %v431_v19, %v429_v18  ;;  %v566_v22 = vld [vmem:[%s1562_s5 + $0x30] sm:$0xff] (!%p320_p2)  ;;  %v434_v23 = vld [vmem:[%s1560_s3 + $0x48] sm:$0xff] (!%p320_p2)  ;;  %v436_v24 = vld [vmem:[%s1560_s3 + $0x58] sm:$0xff] (!%p320_p2) }
   0xb   : > { %918 = vmatprep.subr.bf16.mxu0 (!%p320_p2), %v917_v16  ;;  %v983_v25 = vpack.c.bf16 (!%p320_p2), %v566_v22, %v564_v20  ;;  %v921_v26 = vpack.c.bf16 (!%p320_p2), %v436_v24, %v434_v23  ;;  %v569_v27 = vld [vmem:[%s1562_s5 + $0x48] sm:$0xff] (!%p320_p2)  ;;  %v571_v28 = vld [vmem:[%s1562_s5 + $0x58] sm:$0xff] (!%p320_p2)  ;;  %v433_v29 = vld [vmem:[%s1560_s3 + $0x40] sm:$0xff] (!%p320_p2) }
   0xc   : > { %982 = vmatprep.subr.bf16.mxu1 (!%p320_p2), %v981_v17  ;;  %v985_v30 = vpack.c.bf16 (!%p320_p2), %v571_v28, %v569_v27  ;;  %v435_v31 = vld [vmem:[%s1560_s3 + $0x50] sm:$0xff] (!%p320_p2)  ;;  %v568_v32 = vld [vmem:[%s1562_s5 + $0x40] sm:$0xff] (!%p320_p2)  ;;  %v438_v35 = vld [vmem:[%s1560_s3 + $0x68] sm:$0xff] (!%p320_p2) }
   0xd   : > { %v570_v33 = vld [vmem:[%s1562_s5 + $0x50] sm:$0xff]  ;;  %920 = vmatpush1.bf16.msra.mxu0 %v919_v21  ;;  %v923_v34 = vpack.c.bf16 %v435_v31, %v433_v29  ;;  %v440_v36 = vld [vmem:[%s1560_s3 + $0x78] sm:$0xff]  ;;  %v573_v37 = vld [vmem:[%s1562_s5 + $0x68] sm:$0xff]  ;;  %s1570_s14 = smov (!%p1326_p3, %s897_s14), 1 }
   0xe   : > { %984 = vmatpush1.bf16.msra.mxu1 %v983_v25  ;;  %922 = vmatprep.subr.bf16.mxu0 %v921_v26  ;;  %v987_v38 = vpack.c.bf16 %v570_v33, %v568_v32  ;;  %v925_v39 = vpack.c.bf16 %v440_v36, %v438_v35  ;;  %v575_v40 = vld [vmem:[%s1562_s5 + $0x78] sm:$0xff]  ;;  %v437_v41 = vld [vmem:[%s1560_s3 + $0x60] sm:$0xff]  ;;  %v439_v42 = vld [vmem:[%s1560_s3 + $0x70] sm:$0xff]  ;;  %s912_s22 = sshll.u32 %s1570_s14, 4  ;;  %s904_s25 = sshll.u32 %s1570_s14, 3 }
   0xf   : > { %986 = vmatprep.subr.bf16.mxu1 %v985_v30  ;;  %v989_v43 = vpack.c.bf16 %v575_v40, %v573_v37  ;;  %v572_v44 = vld [vmem:[%s1562_s5 + $0x60] sm:$0xff]  ;;  %v574_v45 = vld [vmem:[%s1562_s5 + $0x70] sm:$0xff]  ;;  %v442_v46 = vld [vmem:[%s1560_s3 + $0x88] sm:$0xff]  ;;  %v927_v50 = vpack.c.bf16 %v439_v42, %v437_v41  ;;  %s1414_s24 = scalar_lea.vmem %s1557_s0, %s912_s22  ;;  %s376_s19 = scalar_lea.vmem %s1564_s7, %s904_s25 }
  0x10   : > { %v444_v47 = vld [vmem:[%s1560_s3 + $0x98] sm:$0xff]  ;;  %v577_v48 = vld [vmem:[%s1562_s5 + $0x88] sm:$0xff]  ;;  %v991_v51 = vpack.c.bf16 %v574_v45, %v572_v44  ;;  %v441_v53 = vld [vmem:[%s1560_s3 + $0x80] sm:$0xff]  ;;  %s906_s23 = sshll.u32 %s1570_s14, 1 }
  0x11   : > { %v579_v49 = vld [vmem:[%s1562_s5 + $0x98] sm:$0xff]  ;;  %924 = vmatpush1.bf16.msra.mxu0 %v923_v34  ;;  %v929_v52 = vpack.c.bf16 %v444_v47, %v442_v46  ;;  %v443_v54 = vld [vmem:[%s1560_s3 + $0x90] sm:$0xff]  ;;  %v576_v55 = vld [vmem:[%s1562_s5 + $0x80] sm:$0xff]  ;;  %v393_v47 = vlaneseq  ;;  %s384_s28 = scalar_lea.vmem %s1566_s9, %s906_s23  ;;  %s388_s22 = scalar_lea.vmem %s1567_s10, %s906_s23 }
  0x12   : > { %988 = vmatpush1.bf16.msra.mxu1 %v987_v38  ;;  %926 = vmatprep.subr.bf16.mxu0 %v925_v39  ;;  %v993_v56 = vpack.c.bf16 %v579_v49, %v577_v48  ;;  %v578_v57 = vld [vmem:[%s1562_s5 + $0x90] sm:$0xff]  ;;  %v446_v58 = vld [vmem:[%s1560_s3 + $0xa8] sm:$0xff]  ;;  %v448_v59 = vld [vmem:[%s1560_s3 + $0xb8] sm:$0xff]  ;;  %v931_v62 = vpack.c.bf16 %v443_v54, %v441_v53 }
  0x13   : > { %990 = vmatprep.subr.bf16.mxu1 %v989_v43  ;;  %v581_v60 = vld [vmem:[%s1562_s5 + $0xa8] sm:$0xff]  ;;  %v583_v61 = vld [vmem:[%s1562_s5 + $0xb8] sm:$0xff]  ;;  %v995_v63 = vpack.c.bf16 %v578_v57, %v576_v55  ;;  %v933_v0 = vpack.c.bf16 %v448_v59, %v446_v58  ;;  %v445_v1 = vld [vmem:[%s1560_s3 + $0xa0] sm:$0xff] }
  0x14   : > { %v447_v2 = vld [vmem:[%s1560_s3 + $0xb0] sm:$0xff]  ;;  %v580_v3 = vld [vmem:[%s1562_s5 + $0xa0] sm:$0xff]  ;;  %v997_v4 = vpack.c.bf16 %v583_v61, %v581_v60  ;;  %v450_v6 = vld [vmem:[%s1560_s3 + $0xc8] sm:$0xff]  ;;  %v1385_v60 = vshrl.u32 %v393_v47, 7 }
  0x15   : > { %928 = vmatpush1.bf16.msra.mxu0 %v927_v50  ;;  %v582_v5 = vld [vmem:[%s1562_s5 + $0xb0] sm:$0xff]  ;;  %v452_v7 = vld [vmem:[%s1560_s3 + $0xd8] sm:$0xff]  ;;  %v585_v8 = vld [vmem:[%s1562_s5 + $0xc8] sm:$0xff]  ;;  %v935_v10 = vpack.c.bf16 %v447_v2, %v445_v1 }
  0x16   : > { %992 = vmatpush1.bf16.msra.mxu1 %v991_v51  ;;  %930 = vmatprep.subr.bf16.mxu0 %v929_v52  ;;  %v587_v9 = vld [vmem:[%s1562_s5 + $0xd8] sm:$0xff]  ;;  %v999_v11 = vpack.c.bf16 %v582_v5, %v580_v3  ;;  %v937_v12 = vpack.c.bf16 %v452_v7, %v450_v6  ;;  %v449_v13 = vld [vmem:[%s1560_s3 + $0xc0] sm:$0xff]  ;;  %v451_v14 = vld [vmem:[%s1560_s3 + $0xd0] sm:$0xff] }
  0x17   : > { %994 = vmatprep.subr.bf16.mxu1 %v993_v56  ;;  %v584_v15 = vld [vmem:[%s1562_s5 + $0xc0] sm:$0xff]  ;;  %v1001_v16 = vpack.c.bf16 %v587_v9, %v585_v8  ;;  %v586_v17 = vld [vmem:[%s1562_s5 + $0xd0] sm:$0xff]  ;;  %v454_v18 = vld [vmem:[%s1560_s3 + $0xe8] sm:$0xff]  ;;  %v939_v22 = vpack.c.bf16 %v451_v14, %v449_v13 }
  0x18   : > { %v456_v19 = vld [vmem:[%s1560_s3 + $0xf8] sm:$0xff]  ;;  %v589_v20 = vld [vmem:[%s1562_s5 + $0xe8] sm:$0xff]  ;;  %v1003_v23 = vpack.c.bf16 %v586_v17, %v584_v15  ;;  %v453_v25 = vld [vmem:[%s1560_s3 + $0xe0] sm:$0xff] }
  0x19   : > { %932 = vmatpush1.bf16.msra.mxu0 %v931_v62  ;;  %v591_v21 = vld [vmem:[%s1562_s5 + $0xf8] sm:$0xff]  ;;  %v941_v24 = vpack.c.bf16 %v456_v19, %v454_v18  ;;  %v455_v26 = vld [vmem:[%s1560_s3 + $0xf0] sm:$0xff]  ;;  %v588_v27 = vld [vmem:[%s1562_s5 + $0xe0] sm:$0xff] }
  0x1a   : > { %996 = vmatpush1.bf16.msra.mxu1 %v995_v63  ;;  %934 = vmatprep.subr.bf16.mxu0 %v933_v0  ;;  %v1005_v28 = vpack.c.bf16 %v591_v21, %v589_v20  ;;  %v590_v29 = vld [vmem:[%s1562_s5 + $0xf0] sm:$0xff]  ;;  %v458_v30 = vld [vmem:[%s1560_s3 + $0x108] sm:$0xff]  ;;  %v460_v31 = vld [vmem:[%s1560_s3 + $0x118] sm:$0xff]  ;;  %v943_v34 = vpack.c.bf16 %v455_v26, %v453_v25 }
  0x1b   : > { %998 = vmatprep.subr.bf16.mxu1 %v997_v4  ;;  %v593_v32 = vld [vmem:[%s1562_s5 + $0x108] sm:$0xff]  ;;  %v595_v33 = vld [vmem:[%s1562_s5 + $0x118] sm:$0xff]  ;;  %v1007_v35 = vpack.c.bf16 %v590_v29, %v588_v27  ;;  %v945_v36 = vpack.c.bf16 %v460_v31, %v458_v30  ;;  %v457_v37 = vld [vmem:[%s1560_s3 + $0x100] sm:$0xff]  ;;  %v395_v27 = vsub.s32 0, %v1385_v60 }
  0x1c   : > { %v459_v38 = vld [vmem:[%s1560_s3 + $0x110] sm:$0xff]  ;;  %v592_v39 = vld [vmem:[%s1562_s5 + $0x100] sm:$0xff]  ;;  %v1009_v40 = vpack.c.bf16 %v595_v33, %v593_v32  ;;  %v462_v42 = vld [vmem:[%s1560_s3 + $0x128] sm:$0xff] }
  0x1d   : > { %936 = vmatpush1.bf16.msra.mxu0 %v935_v10  ;;  %v594_v41 = vld [vmem:[%s1562_s5 + $0x110] sm:$0xff]  ;;  %v464_v43 = vld [vmem:[%s1560_s3 + $0x138] sm:$0xff]  ;;  %v597_v44 = vld [vmem:[%s1562_s5 + $0x128] sm:$0xff]  ;;  %v947_v46 = vpack.c.bf16 %v459_v38, %v457_v37 }
  0x1e   : > { %1000 = vmatpush1.bf16.msra.mxu1 %v999_v11  ;;  %938 = vmatprep.subr.bf16.mxu0 %v937_v12  ;;  %v599_v45 = vld [vmem:[%s1562_s5 + $0x138] sm:$0xff]  ;;  %v1011_v48 = vpack.c.bf16 %v594_v41, %v592_v39  ;;  %v949_v49 = vpack.c.bf16 %v464_v43, %v462_v42  ;;  %v461_v50 = vld [vmem:[%s1560_s3 + $0x120] sm:$0xff]  ;;  %v463_v51 = vld [vmem:[%s1560_s3 + $0x130] sm:$0xff]  ;;  %v399_v11 = vsub.s32 1, %v1385_v60 }
  0x1f   : > { %1002 = vmatprep.subr.bf16.mxu1 %v1001_v16  ;;  %v596_v52 = vld [vmem:[%s1562_s5 + $0x120] sm:$0xff]  ;;  %v1013_v53 = vpack.c.bf16 %v599_v45, %v597_v44  ;;  %v598_v54 = vld [vmem:[%s1562_s5 + $0x130] sm:$0xff]  ;;  %v466_v55 = vld [vmem:[%s1560_s3 + $0x148] sm:$0xff]  ;;  %v951_v59 = vpack.c.bf16 %v463_v51, %v461_v50 }
  0x20   : > { %v468_v56 = vld [vmem:[%s1560_s3 + $0x158] sm:$0xff]  ;;  %v601_v57 = vld [vmem:[%s1562_s5 + $0x148] sm:$0xff]  ;;  %v1015_v61 = vpack.c.bf16 %v598_v54, %v596_v52  ;;  %v465_v63 = vld [vmem:[%s1560_s3 + $0x140] sm:$0xff] }
  0x21   : > { %940 = vmatpush1.bf16.msra.mxu0 %v939_v22  ;;  %v603_v58 = vld [vmem:[%s1562_s5 + $0x158] sm:$0xff]  ;;  %v953_v62 = vpack.c.bf16 %v468_v56, %v466_v55  ;;  %v467_v0 = vld [vmem:[%s1560_s3 + $0x150] sm:$0xff]  ;;  %v600_v1 = vld [vmem:[%s1562_s5 + $0x140] sm:$0xff] }
  0x22   : > { %1004 = vmatpush1.bf16.msra.mxu1 %v1003_v23  ;;  %942 = vmatprep.subr.bf16.mxu0 %v941_v24  ;;  %v1017_v2 = vpack.c.bf16 %v603_v58, %v601_v57  ;;  %v602_v3 = vld [vmem:[%s1562_s5 + $0x150] sm:$0xff]  ;;  %v470_v4 = vld [vmem:[%s1560_s3 + $0x168] sm:$0xff]  ;;  %v472_v5 = vld [vmem:[%s1560_s3 + $0x178] sm:$0xff]  ;;  %v955_v8 = vpack.c.bf16 %v467_v0, %v465_v63 }
  0x23   : > { %1006 = vmatprep.subr.bf16.mxu1 %v1005_v28  ;;  %v605_v6 = vld [vmem:[%s1562_s5 + $0x168] sm:$0xff]  ;;  %v607_v7 = vld [vmem:[%s1562_s5 + $0x178] sm:$0xff]  ;;  %v469_v9 = vld [vmem:[%s1560_s3 + $0x160] sm:$0xff]  ;;  %v1019_v12 = vpack.c.bf16 %v602_v3, %v600_v1  ;;  %v957_v13 = vpack.c.bf16 %v472_v5, %v470_v4 }
  0x24   : > { %v471_v10 = vld [vmem:[%s1560_s3 + $0x170] sm:$0xff]  ;;  %v604_v14 = vld [vmem:[%s1562_s5 + $0x160] sm:$0xff]  ;;  %v474_v16 = vld [vmem:[%s1560_s3 + $0x188] sm:$0xff]  ;;  %v1021_v17 = vpack.c.bf16 %v607_v7, %v605_v6 }
  0x25   : > { %944 = vmatpush1.bf16.msra.mxu0 %v943_v34  ;;  %v606_v15 = vld [vmem:[%s1562_s5 + $0x170] sm:$0xff]  ;;  %v476_v18 = vld [vmem:[%s1560_s3 + $0x198] sm:$0xff]  ;;  %v609_v19 = vld [vmem:[%s1562_s5 + $0x188] sm:$0xff]  ;;  %v959_v24 = vpack.c.bf16 %v471_v10, %v469_v9 }
  0x26   : > { %1008 = vmatpush1.bf16.msra.mxu1 %v1007_v35  ;;  %946 = vmatprep.subr.bf16.mxu0 %v945_v36  ;;  %v390_v20 = vld [vmem:[%s1414_s24 + $0x8] sm:$0xff]  ;;  %v611_v21 = vld [vmem:[%s1562_s5 + $0x198] sm:$0xff]  ;;  %v391_v22 = vld [vmem:[%s1558_s1] sm:$0x3]  ;;  %v1023_v28 = vpack.c.bf16 %v606_v15, %v604_v14  ;;  %v961_v29 = vpack.c.bf16 %v476_v18, %v474_v16 }
  0x27   : > { %1010 = vmatprep.subr.bf16.mxu1 %v1009_v40  ;;  %v405_v23 = vld [vmem:[%s1559_s2] sm:$0x3]  ;;  %688 = vmatprep.mubr.f32.mxu1 %v390_v20  ;;  %v400_v25 = vrot.slane %v391_v22, %v399_v11  ;;  %v475_v31 = vld [vmem:[%s1560_s3 + $0x190] sm:$0xff]  ;;  %v1025_v33 = vpack.c.bf16 %v611_v21, %v609_v19  ;;  %v478_v35 = vld [vmem:[%s1560_s3 + $0x1a8] sm:$0xff]  ;;  %v396_v43 = vrot.slane %v391_v22, %v395_v27 }
  0x28   : > { %v414_v26 = vrot.slane %v405_v23, %v399_v11  ;;  %v473_v30 = vld [vmem:[%s1560_s3 + $0x180] sm:$0xff]  ;;  %v610_v34 = vld [vmem:[%s1562_s5 + $0x190] sm:$0xff]  ;;  %v480_v36 = vld [vmem:[%s1560_s3 + $0x1b8] sm:$0xff] }
  0x29   : > { %948 = vmatpush1.bf16.msra.mxu0 %v947_v46  ;;  %v608_v32 = vld [vmem:[%s1562_s5 + $0x180] sm:$0xff]  ;;  %v404_v37 = vmul.f32 %v400_v25, %v390_v20  ;;  %v613_v38 = vld [vmem:[%s1562_s5 + $0x1a8] sm:$0xff]  ;;  %v615_v39 = vld [vmem:[%s1562_s5 + $0x1b8] sm:$0xff]  ;;  %v963_v40 = vpack.c.bf16 %v475_v31, %v473_v30  ;;  %v965_v45 = vpack.c.bf16 %v480_v36, %v478_v35 }
  0x2a   : > { %1012 = vmatpush1.bf16.msra.mxu1 %v1011_v48  ;;  %950 = vmatprep.subr.bf16.mxu0 %v949_v49  ;;  %v477_v41 = vld [vmem:[%s1560_s3 + $0x1a0] sm:$0xff]  ;;  %v1027_v44 = vpack.c.bf16 %v610_v34, %v608_v32  ;;  %v479_v46 = vld [vmem:[%s1560_s3 + $0x1b0] sm:$0xff]  ;;  %v1029_v49 = vpack.c.bf16 %v615_v39, %v613_v38  ;;  %v482_v51 = vld [vmem:[%s1560_s3 + $0x1c8] sm:$0xff] }
  0x2b   : > { %1014 = vmatprep.subr.bf16.mxu1 %v1013_v53  ;;  %v418_v42 = vadd.f32 %v414_v26, %v404_v37  ;;  %v612_v47 = vld [vmem:[%s1562_s5 + $0x1a0] sm:$0xff]  ;;  %v614_v50 = vld [vmem:[%s1562_s5 + $0x1b0] sm:$0xff]  ;;  %v484_v52 = vld [vmem:[%s1560_s3 + $0x1d8] sm:$0xff]  ;;  %v967_v56 = vpack.c.bf16 %v479_v46, %v477_v41 }
  0x2c   : > { %v389_v48 = vld [vmem:[%s1414_s24] sm:$0xff]  ;;  %v617_v54 = vld [vmem:[%s1562_s5 + $0x1c8] sm:$0xff]  ;;  %v619_v55 = vld [vmem:[%s1562_s5 + $0x1d8] sm:$0xff]  ;;  %v1031_v60 = vpack.c.bf16 %v614_v50, %v612_v47  ;;  %s380_s24 = scalar_lea.vmem %s1565_s8, %s904_s25 }
  0x2d   : > { %952 = vmatpush1.bf16.msra.mxu0 %v951_v59  ;;  %vm420_vm0 = vcmp.ge.f32.partialorder %v418_v42, 0.0  ;;  %v422_v53 = vmul.f32 0.2, %v418_v42  ;;  %v403_v58 = vmul.f32 %v396_v43, %v389_v48  ;;  %v410_v59 = vrot.slane %v405_v23, %v395_v27  ;;  %v483_v63 = vld [vmem:[%s1560_s3 + $0x1d0] sm:$0xff]  ;;  %v616_v0 = vld [vmem:[%s1562_s5 + $0x1c0] sm:$0xff]  ;;  %v486_v3 = vld [vmem:[%s1560_s3 + $0x1e8] sm:$0xff] }
  0x2e   : > { %1016 = vmatpush1.bf16.msra.mxu1 %v1015_v61  ;;  %954 = vmatprep.subr.bf16.mxu0 %v953_v62  ;;  %v969_v61 = vpack.c.bf16 %v484_v52, %v482_v51  ;;  %v481_v62 = vld [vmem:[%s1560_s3 + $0x1c0] sm:$0xff]  ;;  %v1033_v1 = vpack.c.bf16 %v619_v55, %v617_v54  ;;  %v488_v4 = vld [vmem:[%s1560_s3 + $0x1f8] sm:$0xff]  ;;  %v621_v5 = vld [vmem:[%s1562_s5 + $0x1e8] sm:$0xff] }
  0x2f   : > { %1018 = vmatprep.subr.bf16.mxu1 %v1017_v2  ;;  %v424_v57 = vsel %vm420_vm0, %v418_v42, %v422_v53  ;;  %v618_v2 = vld [vmem:[%s1562_s5 + $0x1d0] sm:$0xff]  ;;  %v623_v6 = vld [vmem:[%s1562_s5 + $0x1f8] sm:$0xff]  ;;  %v971_v7 = vpack.c.bf16 %v483_v63, %v481_v62  ;;  %v973_v10 = vpack.c.bf16 %v488_v4, %v486_v3  ;;  %v485_v11 = vld [vmem:[%s1560_s3 + $0x1e0] sm:$0xff] }
  0x30   : > { %553 = vmatprep.mubr.f32.mxu0 %v424_v57  ;;  %v1035_v9 = vpack.c.bf16 %v618_v2, %v616_v0  ;;  %v620_v14 = vld [vmem:[%s1562_s5 + $0x1e0] sm:$0xff]  ;;  %v622_v15 = vld [vmem:[%s1562_s5 + $0x1f0] sm:$0xff] }
  0x31   : > { %956 = vmatpush1.bf16.msra.mxu0 %v955_v8  ;;  %v417_v8 = vadd.f32 %v410_v59, %v403_v58  ;;  %v1039_v18 = vpack.c.bf16 %v622_v15, %v620_v14  ;;  %v908_v20 = vld [vmem:[%s1561_s4] ss:$0 sm:$0xff] }
  0x32   : > { %1020 = vmatpush1.bf16.msra.mxu1 %v1019_v12  ;;  %958 = vmatprep.subr.bf16.mxu0 %v957_v13  ;;  %v487_v12 = vld [vmem:[%s1560_s3 + $0x1f0] sm:$0xff]  ;;  %v1037_v13 = vpack.c.bf16 %v623_v6, %v621_v5  ;;  %v909_v21 = vld [vmem:[%s1563_s6] ss:$0 sm:$0xff] }
  0x33   : > { %1022 = vmatprep.subr.bf16.mxu1 %v1021_v17  ;;  %v975_v16 = vpack.c.bf16 %v487_v12, %v485_v11  ;;  %v421_v17 = vmul.f32 0.2, %v417_v8  ;;  %vm419_vm1 = vcmp.ge.f32.partialorder %v417_v8, 0.0 }
  0x35   : > { %960 = vmatpush1.bf16.msra.mxu0 %v959_v24  ;;  %v423_v19 = vsel %vm419_vm1, %v417_v8, %v421_v17 }
  0x36   : > { %1024 = vmatpush1.bf16.msra.mxu1 %v1023_v28  ;;  %962 = vmatprep.subr.bf16.mxu0 %v961_v29 }
  0x37   : > { %1026 = vmatprep.subr.bf16.mxu1 %v1025_v33 }
  0x39   : > { %964 = vmatpush1.bf16.msra.mxu0 %v963_v40 }
  0x3a   : > { %1028 = vmatpush1.bf16.msra.mxu1 %v1027_v44  ;;  %966 = vmatprep.subr.bf16.mxu0 %v965_v45 }
  0x3b   : > { %1030 = vmatprep.subr.bf16.mxu1 %v1029_v49 }
  0x3d   : > { %968 = vmatpush1.bf16.msra.mxu0 %v967_v56 }
  0x3e   : > { %1032 = vmatpush1.bf16.msra.mxu1 %v1031_v60  ;;  %970 = vmatprep.subr.bf16.mxu0 %v969_v61 }
  0x3f   : > { %1034 = vmatprep.subr.bf16.mxu1 %v1033_v1 }
  0x41   : > { %972 = vmatpush1.bf16.msra.mxu0 %v971_v7 }
  0x42   : > { %1036 = vmatpush1.bf16.msra.mxu1 %v1035_v9  ;;  %974 = vmatprep.subr.bf16.mxu0 %v973_v10 }
  0x43   : > { %1038 = vmatprep.subr.bf16.mxu1 %v1037_v13 }
  0x45   : > { %976 = vmatpush1.bf16.msra.mxu0 %v975_v16 }
  0x46   : > { %1040 = vmatpush1.bf16.msra.mxu1 %v1039_v18 }
  0x48   : > { %554 = vmatmul.mubr.f32.vlgmr.msra.gmra.mrb[0].mxu0 %v423_v19 }
  0x49   : > { %689 = vmatmul.mubr.f32.vlgmr.msra.gmra.mrb[0].mxu1 %v389_v48 }
 0x11b   : > { %v555_v22 = vpop.f32.mrb[0].mxu0 }
 0x11c   : > { %v702_v23 = vadd.f32 %v908_v20, %v555_v22  ;;  %v690_v24 = vpop.f32.mrb[0].mxu1  ;;  %v557_v25 = vpop.f32.mrb[1].mxu0 }
 0x11d   : > { %v711_v26 = vadd.f32 %v909_v21, %v690_v24  ;;  %v692_v27 = vpop.f32.mrb[1].mxu1 }
 0x11e   : > { %703 = vst [vmem:[%s376_s19] sm:$0xff] %v702_v23 }
 0x11f   : > { %712 = vst [vmem:[%s380_s24] sm:$0xff] %v711_v26 }
 0x125   : > { %v713_v28 = vld [vmem:[%s376_s19 + $0x1] sm:$0x7f] }
 0x126   : > { %v714_v29 = vadd.f32 %v713_v28, %v557_v25  ;;  %v716_v30 = vld [vmem:[%s380_s24 + $0x1] sm:$0x7f] }
 0x127   : > { %v717_v31 = vadd.f32 %v716_v30, %v692_v27 }
 0x128   : > { %715 = vst [vmem:[%s376_s19 + $0x1] sm:$0x7f] %v714_v29 }
 0x129   : > { %718 = vst [vmem:[%s380_s24 + $0x1] sm:$0x7f] %v717_v31 }
 0x12f   : > { %v719_v32 = vld [vmem:[%s376_s19] sm:$0xff] }
 0x130   : > { %v721_v33 = vrot.slane %v719_v32, 4  ;;  %v728_v34 = vmul.f32 %v719_v32, %v719_v32  ;;  %v720_v35 = vld [vmem:[%s380_s24] sm:$0xff] }
 0x131   : > { %v736_v36 = vrot.slane %v720_v35, 4  ;;  %v743_v37 = vmul.f32 %v720_v35, %v720_v35 }
 0x132   : > { %v722_v38 = vadd.f32 %v721_v33, %v719_v32  ;;  %v729_v39 = vrot.slane %v728_v34, 4 }
 0x133   : > { %v737_v40 = vadd.f32 %v736_v36, %v720_v35  ;;  %v744_v41 = vrot.slane %v743_v37, 4 }
 0x134   : > { %v723_v42 = vrot.slane %v722_v38, 2  ;;  %v730_v43 = vadd.f32 %v729_v39, %v728_v34 }
 0x135   : > { %v738_v44 = vrot.slane %v737_v40, 2  ;;  %v745_v45 = vadd.f32 %v744_v41, %v743_v37 }
 0x136   : > { %v724_v46 = vadd.f32 %v723_v42, %v722_v38  ;;  %v731_v47 = vrot.slane %v730_v43, 2 }
 0x137   : > { %v739_v48 = vadd.f32 %v738_v44, %v737_v40  ;;  %v746_v49 = vrot.slane %v745_v45, 2 }
 0x138   : > { %v725_v50 = vrot.slane %v724_v46, 1  ;;  %v732_v51 = vadd.f32 %v731_v47, %v730_v43 }
 0x139   : > { %v740_v52 = vrot.slane %v739_v48, 1  ;;  %v747_v53 = vadd.f32 %v746_v49, %v745_v45 }
 0x13a   : > { %v726_v54 = vadd.f32 %v725_v50, %v724_v46  ;;  %v733_v55 = vrot.slane %v732_v51, 1 }
 0x13b   : > { %v741_v56 = vadd.f32 %v740_v52, %v739_v48  ;;  %v748_v57 = vrot.slane %v747_v53, 1 }
 0x13c   : > { %727 = vst [vmem:[%s384_s28] sm:$0x1] %v726_v54  ;;  %v734_v58 = vadd.f32 %v733_v55, %v732_v51 }
 0x13d   : > { %742 = vst [vmem:[%s388_s22] sm:$0x1] %v741_v56  ;;  %v749_v59 = vadd.f32 %v748_v57, %v747_v53 }
 0x13e   : > { %735 = vst [vmem:[%s384_s28 + $0x1] sm:$0x1] %v734_v58 }
 0x13f   : > { %750 = vst [vmem:[%s388_s22 + $0x1] sm:$0x1] %v749_v59 }
 0x140 PF: > { %s21_s13 = sadd.s32 1, %s1055_s13  }
 0x141   : > { %p18_p4 = scmp.ge.s32.totalorder %s21_s13, 4  }
 0x143   :  { %20 = sbr.rel (!%p18_p4) target bundleno = 1 (0x1), region = 114 }

// kernel: residual_conv_forward.3
= control target key start
LH: loop header
LB: loop body
LE: loop exit
PB: predicated region body
PF: predicated region fallthrough
CT: control target
= control target key end

     0   :  { %s818_s27 = smov 0   ;;  %s1014_s0 = inlined_call_operand.vmem [shape: f32[2,8,128], index: 0, kind: input, shape index: {}]   ;;  %s1015_s1 = inlined_call_operand.vmem [shape: f32[2,8,128], index: 1, kind: input, shape index: {}]   ;;  %s1016_s2 = inlined_call_operand.vmem [shape: f32[1,128], index: 2, kind: input, shape index: {}]   ;;  %s1017_s3 = inlined_call_operand.vmem [shape: f32[1,128], index: 3, kind: input, shape index: {}]   ;;  %s1018_s4 = inlined_call_operand.vmem [shape: f32[128,384], index: 4, kind: input, shape index: {}]   ;;  %s1019_s5 = inlined_call_operand.vmem [shape: f32[1,128], index: 5, kind: input, shape index: {}]   ;;  %s1020_s6 = inlined_call_operand.vmem [shape: f32[1,128], index: 6, kind: input, shape index: {}]   ;;  %s1021_s7 = inlined_call_operand.vmem [shape: f32[1,128], index: 7, kind: input, shape index: {}]   ;;  %s1022_s8 = inlined_call_operand.vmem [shape: f32[2,8,128], index: 8, kind: output, shape index: {}]  }
   0x1 LB: > { %s628_s28 = sadd.s32 4294967295, %s768_s27   ;;  %p632_p0 = scmp.ge.s32.totalorder %s768_s27, 1  ;;  %s768_s27 = sphi %s818_s27, %s18_s27  }
   0x2   : > { %p270_p1 = scmp.lt.s32.totalorder %s768_s27, 3 }
   0x4   : > { %p271_p2 = pnand %p632_p0, %p270_p1 }
   0x5   : > { %v339_v0 = vld [vmem:[%s1018_s4 + $0x8] sm:$0xff] (!%p271_p2)  ;;  %v342_v1 = vld [vmem:[%s1018_s4 + $0x20] sm:$0xff] (!%p271_p2)  ;;  %v341_v4 = vld [vmem:[%s1018_s4 + $0x18] sm:$0xff] (!%p271_p2)  ;;  %v770_v7 = vmov (!%p271_p2), 0.0|0.0   ;;  %v771_v8 = vmov (!%p271_p2), 0.0   ;;  %vm772_vm0 = vmmov (!%p271_p2), 0  }
   0x6   : > { %274 = sbr.rel (%p271_p2) target bundleno = 278 (0x116), region = 52  ;;  %v338_v2 = vld [vmem:[%s1018_s4] sm:$0xff] (!%p271_p2)  ;;  %v695_v3 = vpack.c.bf16 (!%p271_p2), %v342_v1, %v339_v0  ;;  %v345_v5 = vld [vmem:[%s1018_s4 + $0x38] sm:$0xff] (!%p271_p2)  ;;  %v348_v6 = vld [vmem:[%s1018_s4 + $0x50] sm:$0xff] (!%p271_p2)  ;;  %727 = vmatprep.subr.bf16.mxu1 (!%p271_p2), %v770_v7  ;;  %450 = vmatprep.mubr.f32.mxu0 (!%p271_p2), %v771_v8  ;;  %p306_p3 = scmp.lt.s32.totalorder (!%p271_p2), %s628_s28, 1 }
   0x7   : > { %v697_v9 = vpack.c.bf16 (!%p271_p2), %v341_v4, %v338_v2  ;;  %v699_v10 = vpack.c.bf16 (!%p271_p2), %v348_v6, %v345_v5  ;;  %v344_v11 = vld [vmem:[%s1018_s4 + $0x30] sm:$0xff] (!%p271_p2)  ;;  %v347_v12 = vld [vmem:[%s1018_s4 + $0x48] sm:$0xff] (!%p271_p2)  ;;  %692 = vmatprep.mubr.msk.f32.mxu1 (!%p271_p2), %vm772_vm0, %v771_v8  ;;  %v354_v14 = vld [vmem:[%s1018_s4 + $0x80] sm:$0xff] (!%p271_p2) }
   0x8   : > { %v351_v13 = vld [vmem:[%s1018_s4 + $0x68] sm:$0xff] (!%p271_p2)  ;;  %696 = vmatprep.subr.bf16.mxu0 (!%p271_p2), %v695_v3  ;;  %v701_v15 = vpack.c.bf16 (!%p271_p2), %v347_v12, %v344_v11  ;;  %v350_v17 = vld [vmem:[%s1018_s4 + $0x60] sm:$0xff] (!%p271_p2)  ;;  %v353_v18 = vld [vmem:[%s1018_s4 + $0x78] sm:$0xff] (!%p271_p2) }
   0x9   : > { %698 = vmatpush1.bf16.msra.mxu0 (!%p271_p2), %v697_v9  ;;  %v703_v16 = vpack.c.bf16 (!%p271_p2), %v354_v14, %v351_v13  ;;  %v357_v19 = vld [vmem:[%s1018_s4 + $0x98] sm:$0xff] (!%p271_p2)  ;;  %v360_v20 = vld [vmem:[%s1018_s4 + $0xb0] sm:$0xff] (!%p271_p2)  ;;  %v705_v21 = vpack.c.bf16 (!%p271_p2), %v353_v18, %v350_v17  ;;  %v343_v23 = vld [vmem:[%s1018_s4 + $0x28] sm:$0xff] (!%p271_p2) }
   0xa   : > { %700 = vmatprep.subr.bf16.mxu0 (!%p271_p2), %v699_v10  ;;  %v340_v22 = vld [vmem:[%s1018_s4 + $0x10] sm:$0xff] (!%p271_p2)  ;;  %v707_v24 = vpack.c.bf16 (!%p271_p2), %v360_v20, %v357_v19  ;;  %v359_v26 = vld [vmem:[%s1018_s4 + $0xa8] sm:$0xff] (!%p271_p2)  ;;  %v366_v29 = vld [vmem:[%s1018_s4 + $0xe0] sm:$0xff] (!%p271_p2) }
   0xb   : > { %v356_v25 = vld [vmem:[%s1018_s4 + $0x90] sm:$0xff] (!%p271_p2)  ;;  %v363_v27 = vld [vmem:[%s1018_s4 + $0xc8] sm:$0xff] (!%p271_p2)  ;;  %v728_v28 = vpack.c.bf16 (!%p271_p2), %v343_v23, %v340_v22  ;;  %v346_v30 = vld [vmem:[%s1018_s4 + $0x40] sm:$0xff] (!%p271_p2) }
   0xc   : > { %v349_v31 = vld [vmem:[%s1018_s4 + $0x58] sm:$0xff] (!%p271_p2)  ;;  %v709_v33 = vpack.c.bf16 (!%p271_p2), %v359_v26, %v356_v25  ;;  %v352_v34 = vld [vmem:[%s1018_s4 + $0x70] sm:$0xff] (!%p271_p2)  ;;  %v355_v35 = vld [vmem:[%s1018_s4 + $0x88] sm:$0xff] (!%p271_p2)  ;;  %v711_v36 = vpack.c.bf16 (!%p271_p2), %v366_v29, %v363_v27 }
   0xd   : > { %s1024_s28 = smov (!%p306_p3, %s628_s28), 1  ;;  %702 = vmatpush1.bf16.msra.mxu0 %v701_v15  ;;  %729 = vmatpush3.bf16.msra.mxu1 %v728_v28  ;;  %v731_v32 = vpack.c.bf16 %v349_v31, %v346_v30  ;;  %v362_v37 = vld [vmem:[%s1018_s4 + $0xc0] sm:$0xff]  ;;  %v365_v38 = vld [vmem:[%s1018_s4 + $0xd8] sm:$0xff]  ;;  %v372_v40 = vld [vmem:[%s1018_s4 + $0x110] sm:$0xff]  ;;  %v734_v41 = vpack.c.bf16 %v355_v35, %v352_v34 }
   0xe   : > { %704 = vmatprep.subr.bf16.mxu0 %v703_v16  ;;  %s897_s11 = sshll.u32 %s1024_s28, 3  ;;  %730 = vmatprep.subr.bf16.mxu1 %v770_v7  ;;  %v369_v39 = vld [vmem:[%s1018_s4 + $0xf8] sm:$0xff]  ;;  %v713_v42 = vpack.c.bf16 %v365_v38, %v362_v37  ;;  %v368_v43 = vld [vmem:[%s1018_s4 + $0xf0] sm:$0xff]  ;;  %v358_v44 = vld [vmem:[%s1018_s4 + $0xa0] sm:$0xff] }
   0xf   : > { %s309_s25 = scalar_lea.vmem %s1014_s0, %s897_s11  ;;  %v361_v45 = vld [vmem:[%s1018_s4 + $0xb8] sm:$0xff]  ;;  %v715_v46 = vpack.c.bf16 %v372_v40, %v369_v39  ;;  %v371_v47 = vld [vmem:[%s1018_s4 + $0x108] sm:$0xff]  ;;  %v636_v49 = vld [vmem:[%s1016_s2] ss:$0 sm:$0xff]  ;;  %s313_s13 = scalar_lea.vmem %s1015_s1, %s897_s11 }
  0x10   : > { %v318_v48 = vld [vmem:[%s309_s25] sm:$0xff]  ;;  %v375_v50 = vld [vmem:[%s1018_s4 + $0x128] sm:$0xff]  ;;  %v737_v52 = vpack.c.bf16 %v361_v45, %v358_v44  ;;  %v717_v53 = vpack.c.bf16 %v371_v47, %v368_v43  ;;  %v364_v55 = vld [vmem:[%s1018_s4 + $0xd0] sm:$0xff]  ;;  %s317_s21 = scalar_lea.vmem %s1022_s8, %s897_s11 }
  0x11   : > { %706 = vmatpush1.bf16.msra.mxu0 %v705_v21  ;;  %732 = vmatpush3.bf16.msra.mxu1 %v731_v32  ;;  %v378_v51 = vld [vmem:[%s1018_s4 + $0x140] sm:$0xff]  ;;  %v326_v54 = vmul.f32 %v636_v49, %v318_v48  ;;  %v367_v56 = vld [vmem:[%s1018_s4 + $0xe8] sm:$0xff]  ;;  %v377_v59 = vld [vmem:[%s1018_s4 + $0x138] sm:$0xff] }
  0x12   : > { %708 = vmatprep.subr.bf16.mxu0 %v707_v24  ;;  %733 = vmatprep.subr.bf16.mxu1 %v770_v7  ;;  %v719_v57 = vpack.c.bf16 %v378_v51, %v375_v50  ;;  %v374_v58 = vld [vmem:[%s1018_s4 + $0x120] sm:$0xff]  ;;  %v381_v61 = vld [vmem:[%s1018_s4 + $0x158] sm:$0xff]  ;;  %v384_v62 = vld [vmem:[%s1018_s4 + $0x170] sm:$0xff]  ;;  %v740_v63 = vpack.c.bf16 %v367_v56, %v364_v55 }
  0x13   : > { %v637_v60 = vld [vmem:[%s1017_s3] ss:$0 sm:$0xff]  ;;  %v721_v0 = vpack.c.bf16 %v377_v59, %v374_v58  ;;  %v373_v3 = vld [vmem:[%s1018_s4 + $0x118] sm:$0xff]  ;;  %v723_v4 = vpack.c.bf16 %v384_v62, %v381_v61  ;;  %v380_v5 = vld [vmem:[%s1018_s4 + $0x150] sm:$0xff] }
  0x14   : > { %v334_v1 = vadd.f32 %v637_v60, %v326_v54  ;;  %v370_v2 = vld [vmem:[%s1018_s4 + $0x100] sm:$0xff]  ;;  %v383_v6 = vld [vmem:[%s1018_s4 + $0x168] sm:$0xff]  ;;  %v376_v11 = vld [vmem:[%s1018_s4 + $0x130] sm:$0xff] }
  0x15   : > { %710 = vmatpush1.bf16.msra.mxu0 %v709_v33  ;;  %735 = vmatpush3.bf16.msra.mxu1 %v734_v41  ;;  %v743_v8 = vpack.c.bf16 %v373_v3, %v370_v2  ;;  %v725_v9 = vpack.c.bf16 %v383_v6, %v380_v5  ;;  %v379_v12 = vld [vmem:[%s1018_s4 + $0x148] sm:$0xff]  ;;  %v382_v15 = vld [vmem:[%s1018_s4 + $0x160] sm:$0xff]  ;;  %v385_v16 = vld [vmem:[%s1018_s4 + $0x178] sm:$0xff] }
  0x16   : > { %712 = vmatprep.subr.bf16.mxu0 %v711_v36  ;;  %736 = vmatprep.subr.bf16.mxu1 %v770_v7  ;;  %v336_v10 = vmul.f32 0.2, %v334_v1  ;;  %vm335_vm1 = vcmp.ge.f32.partialorder %v334_v1, 0.0  ;;  %v746_v13 = vpack.c.bf16 %v379_v12, %v376_v11  ;;  %v749_v17 = vpack.c.bf16 %v385_v16, %v382_v15  ;;  %v527_v18 = vld [vmem:[%s313_s13] sm:$0xff] }
  0x17   : > { %v638_v19 = vld [vmem:[%s1020_s6] ss:$0 sm:$0xff] }
  0x18   : > { %v337_v14 = vsel %vm335_vm1, %v334_v1, %v336_v10  ;;  %v535_v20 = vmul.f32 %v638_v19, %v527_v18  ;;  %v639_v21 = vld [vmem:[%s1021_s7] ss:$0 sm:$0xff] }
  0x19   : > { %714 = vmatpush1.bf16.msra.mxu0 %v713_v42  ;;  %738 = vmatpush3.bf16.msra.mxu1 %v737_v52 }
  0x1a   : > { %716 = vmatprep.subr.bf16.mxu0 %v715_v46  ;;  %739 = vmatprep.subr.bf16.mxu1 %v770_v7  ;;  %v543_v23 = vadd.f32 %v639_v21, %v535_v20 }
  0x1d   : > { %718 = vmatpush1.bf16.msra.mxu0 %v717_v53  ;;  %741 = vmatpush3.bf16.msra.mxu1 %v740_v63 }
  0x1e   : > { %720 = vmatprep.subr.bf16.mxu0 %v719_v57  ;;  %742 = vmatprep.subr.bf16.mxu1 %v770_v7 }
  0x21   : > { %722 = vmatpush1.bf16.msra.mxu0 %v721_v0  ;;  %744 = vmatpush3.bf16.msra.mxu1 %v743_v8 }
  0x22   : > { %724 = vmatprep.subr.bf16.mxu0 %v723_v4  ;;  %745 = vmatprep.subr.bf16.mxu1 %v770_v7 }
  0x25   : > { %726 = vmatpush1.bf16.msra.mxu0 %v725_v9  ;;  %747 = vmatpush3.bf16.msra.mxu1 %v746_v13 }
  0x26   : > { %748 = vmatprep.subr.bf16.mxu1 %v770_v7  ;;  %v640_v7 = vld [vmem:[%s1019_s5] ss:$0 sm:$0xff] }
  0x28   : > { %451 = vmatmul.mubr.f32.vlgmr.msra.gmra.mrb[0].mxu0 %v337_v14 }
  0x29   : > { %750 = vmatpush3.bf16.msra.mxu1 %v749_v17 }
  0x2c   : > { %693 = vmatmul.mubr.f32.vlgmr.msra.gmra.mrb[0].mxu1 %v337_v14 }
  0xfb   : > { %v452_v22 = vpop.f32.mrb[0].mxu0 }
  0xfc   : > { %v454_v24 = vpop.f32.mrb[1].mxu0 }
  0xfd   : > { %v551_v25 = vadd.f32 %v640_v7, %v454_v24 }
  0xff   : > { %v552_v26 = vadd.f32 %v551_v25, %v543_v23  ;;  %v523_v27 = vpop.f32.mrb[0].mxu1 }
 0x100   : > { %v694_v28 = vpop.f32.mrb[1].mxu1  ;;  %v559_v31 = vrot.slane %v523_v27, 1 }
 0x101   : > { %553 = vst [vmem:[%s317_s21] sm:$0xff] %v552_v26 }
 0x108   : > { %v554_v29 = vld [vmem:[%s317_s21 + $0x1] sm:$0x7f] }
 0x109   : > { %v555_v30 = vadd.f32 %v554_v29, %v452_v22 }
 0x10b   : > { %556 = vst [vmem:[%s317_s21 + $0x1] sm:$0x7f] %v555_v30 }
 0x112   : > { %v557_v32 = vld [vmem:[%s317_s21] sm:$0x7f] }
 0x113   : > { %v561_v33 = vadd.f32 %v559_v31, %v557_v32 }
 0x115   : > { %562 = vst [vmem:[%s317_s21] sm:$0x7f] %v561_v33 }
 0x116 PF: > { %s18_s27 = sadd.s32 1, %s768_s27  }
 0x117   : > { %p15_p4 = scmp.ge.s32.totalorder %s18_s27, 4  }
 0x119   :  { %17 = sbr.rel (!%p15_p4) target bundleno = 1 (0x1), region = 85 }

</bundles_post_ra>
